<compile_context>
chip_gen: v6e
topology: v6e:2x2x1
jax: 0.10.0
libtpu: 0.0.40
codegen_flags: <defaults>
</compile_context>

<pallas_src>
import functools

import jax
import jax.numpy as jnp
from jax import lax
from jax.experimental import pallas as pl
from jax.experimental.pallas import tpu as pltpu


_VMEM = pl.BlockSpec(memory_space=pltpu.MemorySpace.VMEM)


def _round_up(x, m):
    return ((x + m - 1) // m) * m


def _padded_vmem_bytes(shape, dtype):
    """Rough (8,128)-tile padded VMEM footprint of one buffer."""
    shape = tuple(int(d) for d in shape)
    if len(shape) < 2:
        shape = (1,) * (2 - len(shape)) + shape
    lead = 1
    for d in shape[:-2]:
        lead *= d
    sub = _round_up(shape[-2], 8)
    lane = _round_up(shape[-1], 128)
    return lead * sub * lane * jnp.dtype(dtype).itemsize


# ----------------------------------------------------------------------------
# Fused Pallas kernel: all LSTM layers + FC in one pallas_call
# ----------------------------------------------------------------------------
def _make_fused_lstm_kernel(T, B_pad, H, layer_dim, mxu_dtype):
    """Kernel signature:
        kernel(x_ref,
               w_ih_0, w_hh_0, b_0, ..., w_ih_{L-1}, w_hh_{L-1}, b_{L-1},
               fc_w, fc_b,
               out_ref, pre_ref[, hseq_ref])

    x_ref:   (T*B_pad, E)  flattened time-major embedded input (row = t*B_pad+b)
    w_ih_l:  (D_in, 4H)    pre-transposed, gate-permuted [i,f,o,g], mxu dtype
    w_hh_l:  (H, 4H)       pre-transposed, gate-permuted, mxu dtype
    b_l:     (1, 4H)       combined (b_ih+b_hh), gate-permuted, f32
    fc_w:    (H, O)        pre-transposed, mxu dtype
    fc_b:    (1, O)        f32
    out_ref: (B_pad, O)
    pre_ref: (T*B_pad,4H)  f32 scratch (hoisted input projection)
    hseq_ref:(T*B_pad, H)  scratch (next layer's input), only if layer_dim > 1
    """
    H4 = 4 * H
    N = T * B_pad
    # Unroll factor that divides T keeps the scan body simple.
    unroll = next(u for u in (8, 4, 2, 1) if T % u == 0)

    def kernel(x_ref, *refs):
        fc_w_ref = refs[3 * layer_dim]
        fc_b_ref = refs[3 * layer_dim + 1]
        out_ref = refs[3 * layer_dim + 2]
        pre_ref = refs[3 * layer_dim + 3]
        hseq_ref = refs[3 * layer_dim + 4] if layer_dim > 1 else None

        x2d = x_ref[...]                                    # (N, D_in), mxu dtype
        h = None
        for l in range(layer_dim):
            # Weight / bias reads hoisted out of the time loop (read once).
            w_ih = refs[3 * l][...]                         # (D_in, 4H)
            w_hh = refs[3 * l + 1][...]                     # (H, 4H)
            b = refs[3 * l + 2][...]                        # (1, 4H), f32

            # Hoisted input projection: one matmul for the whole sequence,
            # written to VMEM scratch (bounds live range of the big activation).
            pre_ref[...] = jnp.dot(
                x2d.astype(mxu_dtype), w_ih,
                preferred_element_type=jnp.float32) + b     # (N, 4H) f32

            store_hidden = (l + 1 < layer_dim)

            def step(t, carry, w_hh=w_hh, store_hidden=store_hidden):
                h, c = carry
                row = pl.multiple_of(t * B_pad, B_pad)
                gates = pre_ref[pl.ds(row, B_pad), :] + jnp.dot(
                    h.astype(mxu_dtype), w_hh,
                    preferred_element_type=jnp.float32)     # (B_pad, 4H) f32
                # Gate columns were permuted in the wrapper to [i, f, o, g]:
                # sigmoid only on the first 3H lanes, tanh only on the last H.
                sig = jax.nn.sigmoid(gates[:, :3 * H])
                g_g = jnp.tanh(gates[:, 3 * H:])
                i_g = sig[:, 0 * H:1 * H]
                f_g = sig[:, 1 * H:2 * H]
                o_g = sig[:, 2 * H:3 * H]
                c = f_g * c + i_g * g_g
                h = o_g * jnp.tanh(c)
                if store_hidden:
                    hseq_ref[pl.ds(row, B_pad), :] = h.astype(hseq_ref.dtype)
                return h, c

            h, _ = lax.fori_loop(
                0, T, step,
                (jnp.zeros((B_pad, H), jnp.float32),
                 jnp.zeros((B_pad, H), jnp.float32)),
                unroll=unroll)

            if store_hidden:
                # Hidden sequence stays on-chip as the next layer's input.
                x2d = hseq_ref[...]                         # (N, H)

        # Final Linear on the last timestep's hidden state.
        logits = jnp.dot(h.astype(mxu_dtype), fc_w_ref[...],
                         preferred_element_type=jnp.float32) + fc_b_ref[...]
        out_ref[...] = logits.astype(out_ref.dtype)

    return kernel


# ----------------------------------------------------------------------------
# Wrapper
# ----------------------------------------------------------------------------
def lstm_model_forward(x_idx, params, layer_dim, mxu_dtype=jnp.bfloat16):
    """x_idx: (B, T) int indices -> (B, O) logits.

    mxu_dtype is the dtype fed to the MXU (weights at rest + matmul operands);
    cell state, gates and all elementwise math stay f32, so bf16 is safe on
    v5e/v6e/v7x (the VPU/EUP never see bf16).  Use jnp.float32 for exactness.
    """
    B, T = x_idx.shape
    H = params["w_hh_l0"].shape[1]
    H4 = 4 * H
    O = params["fc_w"].shape[0]
    B_pad = max(8, _round_up(B, 8))           # sublane-tile aligned per-step rows
    N = T * B_pad

    # Embedding gather directly into flattened, batch-padded, time-major layout.
    idx_tb = x_idx.astype(jnp.int32).T                      # (T, B)
    if B_pad != B:
        idx_tb = jnp.pad(idx_tb, ((0, 0), (0, B_pad - B)))  # pad rows -> token 0
    idx_flat = idx_tb.reshape(N)                            # row = t*B_pad + b
    emb_2d = jnp.take(params["embedding"].astype(jnp.float32),
                      idx_flat, axis=0).astype(mxu_dtype)   # (N, E)

    # Gate-row permutation: PyTorch [i, f, g, o]  ->  kernel [i, f, o, g].
    perm = jnp.concatenate([jnp.arange(0, 2 * H),
                            jnp.arange(3 * H, 4 * H),
                            jnp.arange(2 * H, 3 * H)])

    inputs = [emb_2d]
    for l in range(layer_dim):
        inputs += [
            params[f"w_ih_l{l}"][perm].T.astype(mxu_dtype),          # (D_in, 4H)
            params[f"w_hh_l{l}"][perm].T.astype(mxu_dtype),          # (H, 4H)
            (params[f"b_ih_l{l}"] + params[f"b_hh_l{l}"])[perm]
            .astype(jnp.float32).reshape(1, H4),                     # (1, 4H)
        ]
    inputs += [params["fc_w"].T.astype(mxu_dtype),                   # (H, O)
               params["fc_b"].astype(jnp.float32).reshape(1, O)]     # (1, O)

    scratch_shapes = [pltpu.VMEM((N, H4), jnp.float32)]              # pre
    if layer_dim > 1:
        scratch_shapes.append(pltpu.VMEM((N, H), mxu_dtype))         # hidden seq

    # Size scoped VMEM to the actual buffers (+headroom), instead of relying on
    # the 16/32 MiB defaults (v5e/v6e).
    buf_bytes = sum(_padded_vmem_bytes(a.shape, a.dtype) for a in inputs)
    buf_bytes += _padded_vmem_bytes((B_pad, O), jnp.float32)
    buf_bytes += _padded_vmem_bytes((N, H4), jnp.float32)
    if layer_dim > 1:
        buf_bytes += _padded_vmem_bytes((N, H), mxu_dtype)
    vmem_limit = int(min(max(2 * buf_bytes + (4 << 20), 16 << 20), 64 << 20))

    kernel = _make_fused_lstm_kernel(T, B_pad, H, layer_dim, mxu_dtype)
    out = pl.pallas_call(
        kernel,
        out_shape=jax.ShapeDtypeStruct((B_pad, O), jnp.float32),
        in_specs=[_VMEM] * len(inputs),
        out_specs=_VMEM,
        scratch_shapes=scratch_shapes,
        compiler_params=pltpu.CompilerParams(vmem_limit_bytes=vmem_limit),
    )(*inputs)
    return out[:B]


# ----------------------------------------------------------------------------
# Pure-JAX reference (PyTorch semantics: gate order [i,f,g,o], b_ih+b_hh,
# zero initial states, FC on last timestep)
# ----------------------------------------------------------------------------
def reference_forward(x_idx, params, layer_dim):
    emb = jnp.take(params["embedding"], x_idx.astype(jnp.int32), axis=0)
    x = emb.astype(jnp.float32)                                       # (B, T, E)
    B, T, _ = x.shape
    for l in range(layer_dim):
        w_ih = params[f"w_ih_l{l}"]
        w_hh = params[f"w_hh_l{l}"]
        b = params[f"b_ih_l{l}"] + params[f"b_hh_l{l}"]
        H = w_hh.shape[1]
        h = jnp.zeros((B, H), jnp.float32)
        c = jnp.zeros((B, H), jnp.float32)
        outs = []
        for t in range(T):
            gates = x[:, t, :] @ w_ih.T + h @ w_hh.T + b
            i_g = jax.nn.sigmoid(gates[:, 0:H])
            f_g = jax.nn.sigmoid(gates[:, H:2 * H])
            g_g = jnp.tanh(gates[:, 2 * H:3 * H])
            o_g = jax.nn.sigmoid(gates[:, 3 * H:4 * H])
            c = f_g * c + i_g * g_g
            h = o_g * jnp.tanh(c)
            outs.append(h)
        x = jnp.stack(outs, axis=1)                                   # (B, T, H)
    return x[:, -1, :] @ params["fc_w"].T + params["fc_b"]


# ----------------------------------------------------------------------------
# Parameter init + main
# ----------------------------------------------------------------------------
def init_params(key, char_set_size, embed_dim, hidden_dim, layer_dim, output_dim):
    params = {}
    k = key

    def nxt():
        nonlocal k
        k, sub = jax.random.split(k)
        return sub

    scale = 1.0 / jnp.sqrt(hidden_dim)
    params["embedding"] = jax.random.normal(nxt(), (char_set_size, embed_dim),
                                            jnp.float32)
    for l in range(layer_dim):
        in_dim = embed_dim if l == 0 else hidden_dim
        params[f"w_ih_l{l}"] = scale * jax.random.normal(
            nxt(), (4 * hidden_dim, in_dim), jnp.float32)
        params[f"w_hh_l{l}"] = scale * jax.random.normal(
            nxt(), (4 * hidden_dim, hidden_dim), jnp.float32)
        params[f"b_ih_l{l}"] = scale * jax.random.normal(
            nxt(), (4 * hidden_dim,), jnp.float32)
        params[f"b_hh_l{l}"] = scale * jax.random.normal(
            nxt(), (4 * hidden_dim,), jnp.float32)
    params["fc_w"] = scale * jax.random.normal(
        nxt(), (output_dim, hidden_dim), jnp.float32)
    params["fc_b"] = scale * jax.random.normal(nxt(), (output_dim,), jnp.float32)
    return params


if __name__ == "__main__":
    char_set_size = 16
    embed_dim = 8
    hidden_dim = 32
    layer_dim = 2
    output_dim = 10
    batch = 2
    seq = 8

    key = jax.random.PRNGKey(0)
    key, k_idx = jax.random.split(key)
    x_idx = jax.random.randint(k_idx, (batch, seq), 0, char_set_size, jnp.int32)
    params = init_params(key, char_set_size, embed_dim, hidden_dim,
                         layer_dim, output_dim)

    ref = reference_forward(x_idx, params, layer_dim)

    # f32 MXU path (tight check against the f32 reference).
    fwd_f32 = jax.jit(functools.partial(lstm_model_forward, layer_dim=layer_dim,
                                        mxu_dtype=jnp.float32))
    out = jax.block_until_ready(fwd_f32(x_idx, params))
    assert out.shape == (batch, output_dim)
    assert jnp.allclose(out, ref, atol=5e-4, rtol=5e-4), \
        "f32 kernel mismatch vs pure-JAX reference"

    # bf16 MXU-operand path (recommended default, v5e-safe: cell state and gate
    # nonlinearities stay f32), checked with a loose tolerance.
    fwd_bf16 = jax.jit(functools.partial(lstm_model_forward, layer_dim=layer_dim,
                                         mxu_dtype=jnp.bfloat16))
    out_bf16 = jax.block_until_ready(fwd_bf16(x_idx, params))
    assert out_bf16.shape == (batch, output_dim)
    assert jnp.allclose(out_bf16, ref, atol=1e-1, rtol=1e-1), \
        "bf16-MXU kernel diverged from reference"

    print("KERNEL_OK")
</pallas_src>

<mosaic_0001>
module attributes {stable_mosaic.version = 11 : i64} {
  func.func @kernel(%arg0: memref<64x8xf32, #tpu.memory_space<vmem>>, %arg1: memref<8x128xf32, #tpu.memory_space<vmem>>, %arg2: memref<32x128xf32, #tpu.memory_space<vmem>>, %arg3: memref<1x128xf32, #tpu.memory_space<vmem>>, %arg4: memref<32x128xf32, #tpu.memory_space<vmem>>, %arg5: memref<32x128xf32, #tpu.memory_space<vmem>>, %arg6: memref<1x128xf32, #tpu.memory_space<vmem>>, %arg7: memref<32x10xf32, #tpu.memory_space<vmem>>, %arg8: memref<1x10xf32, #tpu.memory_space<vmem>>, %arg9: memref<8x10xf32, #tpu.memory_space<vmem>>, %arg10: memref<64x128xf32, #tpu.memory_space<vmem>>, %arg11: memref<64x32xf32, #tpu.memory_space<vmem>>) attributes {dimension_semantics = [], scalar_prefetch = 0 : i64, scratch_operands = 2 : i64, tpu.core_type = #tpu.core_type<tc>} {
    %c0 = arith.constant 0 : index
    %c0_0 = arith.constant 0 : index
    %0 = vector.load %arg0[%c0, %c0_0] : memref<64x8xf32, #tpu.memory_space<vmem>>, vector<64x8xf32>
    %c0_1 = arith.constant 0 : index
    %c0_2 = arith.constant 0 : index
    %1 = vector.load %arg1[%c0_1, %c0_2] : memref<8x128xf32, #tpu.memory_space<vmem>>, vector<8x128xf32>
    %c0_3 = arith.constant 0 : index
    %c0_4 = arith.constant 0 : index
    %2 = vector.load %arg2[%c0_3, %c0_4] : memref<32x128xf32, #tpu.memory_space<vmem>>, vector<32x128xf32>
    %c0_5 = arith.constant 0 : index
    %c0_6 = arith.constant 0 : index
    %3 = vector.load %arg3[%c0_5, %c0_6] : memref<1x128xf32, #tpu.memory_space<vmem>>, vector<1x128xf32>
    %cst = arith.constant dense<0.000000e+00> : vector<64x128xf32>
    %4 = tpu.matmul %0, %1, %cst {dimension_numbers = #tpu.dot_dimension_numbers<[1], [0], [0], [1], [0, 0, 1, 1], [], []>} : vector<64x8xf32>, vector<8x128xf32>, vector<64x128xf32> -> vector<64x128xf32>
    %5 = vector.broadcast %3 : vector<1x128xf32> to vector<64x128xf32>
    %6 = arith.addf %4, %5 : vector<64x128xf32>
    %c0_7 = arith.constant 0 : index
    %c0_8 = arith.constant 0 : index
    %7 = vector.load %arg10[%c0_7, %c0_8] : memref<64x128xf32, #tpu.memory_space<vmem>>, vector<64x128xf32>
    tpu.vector_store %arg10[%c0_7, %c0_8], %6 {strides = array<i32>} : memref<64x128xf32, #tpu.memory_space<vmem>>, vector<64x128xf32>,
    %cst_9 = arith.constant 0.000000e+00 : f32
    %8 = vector.broadcast %cst_9 : f32 to vector<8x32xf32>
    %cst_10 = arith.constant 0.000000e+00 : f32
    %9 = vector.broadcast %cst_10 : f32 to vector<8x32xf32>
    %c0_i32 = arith.constant 0 : i32
    %c8_i32 = arith.constant 8 : i32
    %10 = arith.muli %c0_i32, %c8_i32 : i32
    %11 = tpu.assume_multiple %10, 8 : i32
    %12 = arith.index_cast %11 : i32 to index
    %c0_11 = arith.constant 0 : index
    %13 = vector.load %arg10[%12, %c0_11] : memref<64x128xf32, #tpu.memory_space<vmem>>, vector<8x128xf32>
    %cst_12 = arith.constant dense<0.000000e+00> : vector<8x128xf32>
    %14 = tpu.matmul %8, %2, %cst_12 {dimension_numbers = #tpu.dot_dimension_numbers<[1], [0], [0], [1], [0, 0, 1, 1], [], []>} : vector<8x32xf32>, vector<32x128xf32>, vector<8x128xf32> -> vector<8x128xf32>
    %15 = arith.addf %13, %14 : vector<8x128xf32>
    %16 = vector.extract_strided_slice %15 {offsets = [0, 0], sizes = [8, 96], strides = [1, 1]} : vector<8x128xf32> to vector<8x96xf32>
    %17 = arith.negf %16 : vector<8x96xf32>
    %18 = math.exp %17 : vector<8x96xf32>
    %cst_13 = arith.constant 1.000000e+00 : f32
    %19 = vector.broadcast %cst_13 : f32 to vector<8x96xf32>
    %20 = arith.addf %19, %18 : vector<8x96xf32>
    %21 = arith.divf %19, %20 : vector<8x96xf32>
    %22 = vector.extract_strided_slice %15 {offsets = [0, 96], sizes = [8, 32], strides = [1, 1]} : vector<8x128xf32> to vector<8x32xf32>
    %23 = math.tanh %22 : vector<8x32xf32>
    %24 = vector.extract_strided_slice %21 {offsets = [0, 0], sizes = [8, 32], strides = [1, 1]} : vector<8x96xf32> to vector<8x32xf32>
    %25 = vector.extract_strided_slice %21 {offsets = [0, 32], sizes = [8, 32], strides = [1, 1]} : vector<8x96xf32> to vector<8x32xf32>
    %26 = vector.extract_strided_slice %21 {offsets = [0, 64], sizes = [8, 32], strides = [1, 1]} : vector<8x96xf32> to vector<8x32xf32>
    %27 = arith.mulf %25, %9 : vector<8x32xf32>
    %28 = arith.mulf %24, %23 : vector<8x32xf32>
    %29 = arith.addf %27, %28 : vector<8x32xf32>
    %30 = math.tanh %29 : vector<8x32xf32>
    %31 = arith.mulf %26, %30 : vector<8x32xf32>
    %32 = arith.index_cast %11 : i32 to index
    %c0_14 = arith.constant 0 : index
    %33 = vector.load %arg11[%32, %c0_14] : memref<64x32xf32, #tpu.memory_space<vmem>>, vector<8x32xf32>
    tpu.vector_store %arg11[%32, %c0_14], %31 {strides = array<i32>} : memref<64x32xf32, #tpu.memory_space<vmem>>, vector<8x32xf32>,
    %c1_i32 = arith.constant 1 : i32
    %c8_i32_15 = arith.constant 8 : i32
    %34 = arith.muli %c1_i32, %c8_i32_15 : i32
    %35 = tpu.assume_multiple %34, 8 : i32
    %36 = arith.index_cast %35 : i32 to index
    %c0_16 = arith.constant 0 : index
    %37 = vector.load %arg10[%36, %c0_16] : memref<64x128xf32, #tpu.memory_space<vmem>>, vector<8x128xf32>
    %cst_17 = arith.constant dense<0.000000e+00> : vector<8x128xf32>
    %38 = tpu.matmul %31, %2, %cst_17 {dimension_numbers = #tpu.dot_dimension_numbers<[1], [0], [0], [1], [0, 0, 1, 1], [], []>} : vector<8x32xf32>, vector<32x128xf32>, vector<8x128xf32> -> vector<8x128xf32>
    %39 = arith.addf %37, %38 : vector<8x128xf32>
    %40 = vector.extract_strided_slice %39 {offsets = [0, 0], sizes = [8, 96], strides = [1, 1]} : vector<8x128xf32> to vector<8x96xf32>
    %41 = arith.negf %40 : vector<8x96xf32>
    %42 = math.exp %41 : vector<8x96xf32>
    %cst_18 = arith.constant 1.000000e+00 : f32
    %43 = vector.broadcast %cst_18 : f32 to vector<8x96xf32>
    %44 = arith.addf %43, %42 : vector<8x96xf32>
    %45 = arith.divf %43, %44 : vector<8x96xf32>
    %46 = vector.extract_strided_slice %39 {offsets = [0, 96], sizes = [8, 32], strides = [1, 1]} : vector<8x128xf32> to vector<8x32xf32>
    %47 = math.tanh %46 : vector<8x32xf32>
    %48 = vector.extract_strided_slice %45 {offsets = [0, 0], sizes = [8, 32], strides = [1, 1]} : vector<8x96xf32> to vector<8x32xf32>
    %49 = vector.extract_strided_slice %45 {offsets = [0, 32], sizes = [8, 32], strides = [1, 1]} : vector<8x96xf32> to vector<8x32xf32>
    %50 = vector.extract_strided_slice %45 {offsets = [0, 64], sizes = [8, 32], strides = [1, 1]} : vector<8x96xf32> to vector<8x32xf32>
    %51 = arith.mulf %49, %29 : vector<8x32xf32>
    %52 = arith.mulf %48, %47 : vector<8x32xf32>
    %53 = arith.addf %51, %52 : vector<8x32xf32>
    %54 = math.tanh %53 : vector<8x32xf32>
    %55 = arith.mulf %50, %54 : vector<8x32xf32>
    %56 = arith.index_cast %35 : i32 to index
    %c0_19 = arith.constant 0 : index
    %57 = vector.load %arg11[%56, %c0_19] : memref<64x32xf32, #tpu.memory_space<vmem>>, vector<8x32xf32>
    tpu.vector_store %arg11[%56, %c0_19], %55 {strides = array<i32>} : memref<64x32xf32, #tpu.memory_space<vmem>>, vector<8x32xf32>,
    %c2_i32 = arith.constant 2 : i32
    %c8_i32_20 = arith.constant 8 : i32
    %58 = arith.muli %c2_i32, %c8_i32_20 : i32
    %59 = tpu.assume_multiple %58, 8 : i32
    %60 = arith.index_cast %59 : i32 to index
    %c0_21 = arith.constant 0 : index
    %61 = vector.load %arg10[%60, %c0_21] : memref<64x128xf32, #tpu.memory_space<vmem>>, vector<8x128xf32>
    %cst_22 = arith.constant dense<0.000000e+00> : vector<8x128xf32>
    %62 = tpu.matmul %55, %2, %cst_22 {dimension_numbers = #tpu.dot_dimension_numbers<[1], [0], [0], [1], [0, 0, 1, 1], [], []>} : vector<8x32xf32>, vector<32x128xf32>, vector<8x128xf32> -> vector<8x128xf32>
    %63 = arith.addf %61, %62 : vector<8x128xf32>
    %64 = vector.extract_strided_slice %63 {offsets = [0, 0], sizes = [8, 96], strides = [1, 1]} : vector<8x128xf32> to vector<8x96xf32>
    %65 = arith.negf %64 : vector<8x96xf32>
    %66 = math.exp %65 : vector<8x96xf32>
    %cst_23 = arith.constant 1.000000e+00 : f32
    %67 = vector.broadcast %cst_23 : f32 to vector<8x96xf32>
    %68 = arith.addf %67, %66 : vector<8x96xf32>
    %69 = arith.divf %67, %68 : vector<8x96xf32>
    %70 = vector.extract_strided_slice %63 {offsets = [0, 96], sizes = [8, 32], strides = [1, 1]} : vector<8x128xf32> to vector<8x32xf32>
    %71 = math.tanh %70 : vector<8x32xf32>
    %72 = vector.extract_strided_slice %69 {offsets = [0, 0], sizes = [8, 32], strides = [1, 1]} : vector<8x96xf32> to vector<8x32xf32>
    %73 = vector.extract_strided_slice %69 {offsets = [0, 32], sizes = [8, 32], strides = [1, 1]} : vector<8x96xf32> to vector<8x32xf32>
    %74 = vector.extract_strided_slice %69 {offsets = [0, 64], sizes = [8, 32], strides = [1, 1]} : vector<8x96xf32> to vector<8x32xf32>
    %75 = arith.mulf %73, %53 : vector<8x32xf32>
    %76 = arith.mulf %72, %71 : vector<8x32xf32>
    %77 = arith.addf %75, %76 : vector<8x32xf32>
    %78 = math.tanh %77 : vector<8x32xf32>
    %79 = arith.mulf %74, %78 : vector<8x32xf32>
    %80 = arith.index_cast %59 : i32 to index
    %c0_24 = arith.constant 0 : index
    %81 = vector.load %arg11[%80, %c0_24] : memref<64x32xf32, #tpu.memory_space<vmem>>, vector<8x32xf32>
    tpu.vector_store %arg11[%80, %c0_24], %79 {strides = array<i32>} : memref<64x32xf32, #tpu.memory_space<vmem>>, vector<8x32xf32>,
    %c3_i32 = arith.constant 3 : i32
    %c8_i32_25 = arith.constant 8 : i32
    %82 = arith.muli %c3_i32, %c8_i32_25 : i32
    %83 = tpu.assume_multiple %82, 8 : i32
    %84 = arith.index_cast %83 : i32 to index
    %c0_26 = arith.constant 0 : index
    %85 = vector.load %arg10[%84, %c0_26] : memref<64x128xf32, #tpu.memory_space<vmem>>, vector<8x128xf32>
    %cst_27 = arith.constant dense<0.000000e+00> : vector<8x128xf32>
    %86 = tpu.matmul %79, %2, %cst_27 {dimension_numbers = #tpu.dot_dimension_numbers<[1], [0], [0], [1], [0, 0, 1, 1], [], []>} : vector<8x32xf32>, vector<32x128xf32>, vector<8x128xf32> -> vector<8x128xf32>
    %87 = arith.addf %85, %86 : vector<8x128xf32>
    %88 = vector.extract_strided_slice %87 {offsets = [0, 0], sizes = [8, 96], strides = [1, 1]} : vector<8x128xf32> to vector<8x96xf32>
    %89 = arith.negf %88 : vector<8x96xf32>
    %90 = math.exp %89 : vector<8x96xf32>
    %cst_28 = arith.constant 1.000000e+00 : f32
    %91 = vector.broadcast %cst_28 : f32 to vector<8x96xf32>
    %92 = arith.addf %91, %90 : vector<8x96xf32>
    %93 = arith.divf %91, %92 : vector<8x96xf32>
    %94 = vector.extract_strided_slice %87 {offsets = [0, 96], sizes = [8, 32], strides = [1, 1]} : vector<8x128xf32> to vector<8x32xf32>
    %95 = math.tanh %94 : vector<8x32xf32>
    %96 = vector.extract_strided_slice %93 {offsets = [0, 0], sizes = [8, 32], strides = [1, 1]} : vector<8x96xf32> to vector<8x32xf32>
    %97 = vector.extract_strided_slice %93 {offsets = [0, 32], sizes = [8, 32], strides = [1, 1]} : vector<8x96xf32> to vector<8x32xf32>
    %98 = vector.extract_strided_slice %93 {offsets = [0, 64], sizes = [8, 32], strides = [1, 1]} : vector<8x96xf32> to vector<8x32xf32>
    %99 = arith.mulf %97, %77 : vector<8x32xf32>
    %100 = arith.mulf %96, %95 : vector<8x32xf32>
    %101 = arith.addf %99, %100 : vector<8x32xf32>
    %102 = math.tanh %101 : vector<8x32xf32>
    %103 = arith.mulf %98, %102 : vector<8x32xf32>
    %104 = arith.index_cast %83 : i32 to index
    %c0_29 = arith.constant 0 : index
    %105 = vector.load %arg11[%104, %c0_29] : memref<64x32xf32, #tpu.memory_space<vmem>>, vector<8x32xf32>
    tpu.vector_store %arg11[%104, %c0_29], %103 {strides = array<i32>} : memref<64x32xf32, #tpu.memory_space<vmem>>, vector<8x32xf32>,
    %c4_i32 = arith.constant 4 : i32
    %c8_i32_30 = arith.constant 8 : i32
    %106 = arith.muli %c4_i32, %c8_i32_30 : i32
    %107 = tpu.assume_multiple %106, 8 : i32
    %108 = arith.index_cast %107 : i32 to index
    %c0_31 = arith.constant 0 : index
    %109 = vector.load %arg10[%108, %c0_31] : memref<64x128xf32, #tpu.memory_space<vmem>>, vector<8x128xf32>
    %cst_32 = arith.constant dense<0.000000e+00> : vector<8x128xf32>
    %110 = tpu.matmul %103, %2, %cst_32 {dimension_numbers = #tpu.dot_dimension_numbers<[1], [0], [0], [1], [0, 0, 1, 1], [], []>} : vector<8x32xf32>, vector<32x128xf32>, vector<8x128xf32> -> vector<8x128xf32>
    %111 = arith.addf %109, %110 : vector<8x128xf32>
    %112 = vector.extract_strided_slice %111 {offsets = [0, 0], sizes = [8, 96], strides = [1, 1]} : vector<8x128xf32> to vector<8x96xf32>
    %113 = arith.negf %112 : vector<8x96xf32>
    %114 = math.exp %113 : vector<8x96xf32>
    %cst_33 = arith.constant 1.000000e+00 : f32
    %115 = vector.broadcast %cst_33 : f32 to vector<8x96xf32>
    %116 = arith.addf %115, %114 : vector<8x96xf32>
    %117 = arith.divf %115, %116 : vector<8x96xf32>
    %118 = vector.extract_strided_slice %111 {offsets = [0, 96], sizes = [8, 32], strides = [1, 1]} : vector<8x128xf32> to vector<8x32xf32>
    %119 = math.tanh %118 : vector<8x32xf32>
    %120 = vector.extract_strided_slice %117 {offsets = [0, 0], sizes = [8, 32], strides = [1, 1]} : vector<8x96xf32> to vector<8x32xf32>
    %121 = vector.extract_strided_slice %117 {offsets = [0, 32], sizes = [8, 32], strides = [1, 1]} : vector<8x96xf32> to vector<8x32xf32>
    %122 = vector.extract_strided_slice %117 {offsets = [0, 64], sizes = [8, 32], strides = [1, 1]} : vector<8x96xf32> to vector<8x32xf32>
    %123 = arith.mulf %121, %101 : vector<8x32xf32>
    %124 = arith.mulf %120, %119 : vector<8x32xf32>
    %125 = arith.addf %123, %124 : vector<8x32xf32>
    %126 = math.tanh %125 : vector<8x32xf32>
    %127 = arith.mulf %122, %126 : vector<8x32xf32>
    %128 = arith.index_cast %107 : i32 to index
    %c0_34 = arith.constant 0 : index
    %129 = vector.load %arg11[%128, %c0_34] : memref<64x32xf32, #tpu.memory_space<vmem>>, vector<8x32xf32>
    tpu.vector_store %arg11[%128, %c0_34], %127 {strides = array<i32>} : memref<64x32xf32, #tpu.memory_space<vmem>>, vector<8x32xf32>,
    %c5_i32 = arith.constant 5 : i32
    %c8_i32_35 = arith.constant 8 : i32
    %130 = arith.muli %c5_i32, %c8_i32_35 : i32
    %131 = tpu.assume_multiple %130, 8 : i32
    %132 = arith.index_cast %131 : i32 to index
    %c0_36 = arith.constant 0 : index
    %133 = vector.load %arg10[%132, %c0_36] : memref<64x128xf32, #tpu.memory_space<vmem>>, vector<8x128xf32>
    %cst_37 = arith.constant dense<0.000000e+00> : vector<8x128xf32>
    %134 = tpu.matmul %127, %2, %cst_37 {dimension_numbers = #tpu.dot_dimension_numbers<[1], [0], [0], [1], [0, 0, 1, 1], [], []>} : vector<8x32xf32>, vector<32x128xf32>, vector<8x128xf32> -> vector<8x128xf32>
    %135 = arith.addf %133, %134 : vector<8x128xf32>
    %136 = vector.extract_strided_slice %135 {offsets = [0, 0], sizes = [8, 96], strides = [1, 1]} : vector<8x128xf32> to vector<8x96xf32>
    %137 = arith.negf %136 : vector<8x96xf32>
    %138 = math.exp %137 : vector<8x96xf32>
    %cst_38 = arith.constant 1.000000e+00 : f32
    %139 = vector.broadcast %cst_38 : f32 to vector<8x96xf32>
    %140 = arith.addf %139, %138 : vector<8x96xf32>
    %141 = arith.divf %139, %140 : vector<8x96xf32>
    %142 = vector.extract_strided_slice %135 {offsets = [0, 96], sizes = [8, 32], strides = [1, 1]} : vector<8x128xf32> to vector<8x32xf32>
    %143 = math.tanh %142 : vector<8x32xf32>
    %144 = vector.extract_strided_slice %141 {offsets = [0, 0], sizes = [8, 32], strides = [1, 1]} : vector<8x96xf32> to vector<8x32xf32>
    %145 = vector.extract_strided_slice %141 {offsets = [0, 32], sizes = [8, 32], strides = [1, 1]} : vector<8x96xf32> to vector<8x32xf32>
    %146 = vector.extract_strided_slice %141 {offsets = [0, 64], sizes = [8, 32], strides = [1, 1]} : vector<8x96xf32> to vector<8x32xf32>
    %147 = arith.mulf %145, %125 : vector<8x32xf32>
    %148 = arith.mulf %144, %143 : vector<8x32xf32>
    %149 = arith.addf %147, %148 : vector<8x32xf32>
    %150 = math.tanh %149 : vector<8x32xf32>
    %151 = arith.mulf %146, %150 : vector<8x32xf32>
    %152 = arith.index_cast %131 : i32 to index
    %c0_39 = arith.constant 0 : index
    %153 = vector.load %arg11[%152, %c0_39] : memref<64x32xf32, #tpu.memory_space<vmem>>, vector<8x32xf32>
    tpu.vector_store %arg11[%152, %c0_39], %151 {strides = array<i32>} : memref<64x32xf32, #tpu.memory_space<vmem>>, vector<8x32xf32>,
    %c6_i32 = arith.constant 6 : i32
    %c8_i32_40 = arith.constant 8 : i32
    %154 = arith.muli %c6_i32, %c8_i32_40 : i32
    %155 = tpu.assume_multiple %154, 8 : i32
    %156 = arith.index_cast %155 : i32 to index
    %c0_41 = arith.constant 0 : index
    %157 = vector.load %arg10[%156, %c0_41] : memref<64x128xf32, #tpu.memory_space<vmem>>, vector<8x128xf32>
    %cst_42 = arith.constant dense<0.000000e+00> : vector<8x128xf32>
    %158 = tpu.matmul %151, %2, %cst_42 {dimension_numbers = #tpu.dot_dimension_numbers<[1], [0], [0], [1], [0, 0, 1, 1], [], []>} : vector<8x32xf32>, vector<32x128xf32>, vector<8x128xf32> -> vector<8x128xf32>
    %159 = arith.addf %157, %158 : vector<8x128xf32>
    %160 = vector.extract_strided_slice %159 {offsets = [0, 0], sizes = [8, 96], strides = [1, 1]} : vector<8x128xf32> to vector<8x96xf32>
    %161 = arith.negf %160 : vector<8x96xf32>
    %162 = math.exp %161 : vector<8x96xf32>
    %cst_43 = arith.constant 1.000000e+00 : f32
    %163 = vector.broadcast %cst_43 : f32 to vector<8x96xf32>
    %164 = arith.addf %163, %162 : vector<8x96xf32>
    %165 = arith.divf %163, %164 : vector<8x96xf32>
    %166 = vector.extract_strided_slice %159 {offsets = [0, 96], sizes = [8, 32], strides = [1, 1]} : vector<8x128xf32> to vector<8x32xf32>
    %167 = math.tanh %166 : vector<8x32xf32>
    %168 = vector.extract_strided_slice %165 {offsets = [0, 0], sizes = [8, 32], strides = [1, 1]} : vector<8x96xf32> to vector<8x32xf32>
    %169 = vector.extract_strided_slice %165 {offsets = [0, 32], sizes = [8, 32], strides = [1, 1]} : vector<8x96xf32> to vector<8x32xf32>
    %170 = vector.extract_strided_slice %165 {offsets = [0, 64], sizes = [8, 32], strides = [1, 1]} : vector<8x96xf32> to vector<8x32xf32>
    %171 = arith.mulf %169, %149 : vector<8x32xf32>
    %172 = arith.mulf %168, %167 : vector<8x32xf32>
    %173 = arith.addf %171, %172 : vector<8x32xf32>
    %174 = math.tanh %173 : vector<8x32xf32>
    %175 = arith.mulf %170, %174 : vector<8x32xf32>
    %176 = arith.index_cast %155 : i32 to index
    %c0_44 = arith.constant 0 : index
    %177 = vector.load %arg11[%176, %c0_44] : memref<64x32xf32, #tpu.memory_space<vmem>>, vector<8x32xf32>
    tpu.vector_store %arg11[%176, %c0_44], %175 {strides = array<i32>} : memref<64x32xf32, #tpu.memory_space<vmem>>, vector<8x32xf32>,
    %c7_i32 = arith.constant 7 : i32
    %c8_i32_45 = arith.constant 8 : i32
    %178 = arith.muli %c7_i32, %c8_i32_45 : i32
    %179 = tpu.assume_multiple %178, 8 : i32
    %180 = arith.index_cast %179 : i32 to index
    %c0_46 = arith.constant 0 : index
    %181 = vector.load %arg10[%180, %c0_46] : memref<64x128xf32, #tpu.memory_space<vmem>>, vector<8x128xf32>
    %cst_47 = arith.constant dense<0.000000e+00> : vector<8x128xf32>
    %182 = tpu.matmul %175, %2, %cst_47 {dimension_numbers = #tpu.dot_dimension_numbers<[1], [0], [0], [1], [0, 0, 1, 1], [], []>} : vector<8x32xf32>, vector<32x128xf32>, vector<8x128xf32> -> vector<8x128xf32>
    %183 = arith.addf %181, %182 : vector<8x128xf32>
    %184 = vector.extract_strided_slice %183 {offsets = [0, 0], sizes = [8, 96], strides = [1, 1]} : vector<8x128xf32> to vector<8x96xf32>
    %185 = arith.negf %184 : vector<8x96xf32>
    %186 = math.exp %185 : vector<8x96xf32>
    %cst_48 = arith.constant 1.000000e+00 : f32
    %187 = vector.broadcast %cst_48 : f32 to vector<8x96xf32>
    %188 = arith.addf %187, %186 : vector<8x96xf32>
    %189 = arith.divf %187, %188 : vector<8x96xf32>
    %190 = vector.extract_strided_slice %183 {offsets = [0, 96], sizes = [8, 32], strides = [1, 1]} : vector<8x128xf32> to vector<8x32xf32>
    %191 = math.tanh %190 : vector<8x32xf32>
    %192 = vector.extract_strided_slice %189 {offsets = [0, 0], sizes = [8, 32], strides = [1, 1]} : vector<8x96xf32> to vector<8x32xf32>
    %193 = vector.extract_strided_slice %189 {offsets = [0, 32], sizes = [8, 32], strides = [1, 1]} : vector<8x96xf32> to vector<8x32xf32>
    %194 = vector.extract_strided_slice %189 {offsets = [0, 64], sizes = [8, 32], strides = [1, 1]} : vector<8x96xf32> to vector<8x32xf32>
    %195 = arith.mulf %193, %173 : vector<8x32xf32>
    %196 = arith.mulf %192, %191 : vector<8x32xf32>
    %197 = arith.addf %195, %196 : vector<8x32xf32>
    %198 = math.tanh %197 : vector<8x32xf32>
    %199 = arith.mulf %194, %198 : vector<8x32xf32>
    %200 = arith.index_cast %179 : i32 to index
    %c0_49 = arith.constant 0 : index
    %201 = vector.load %arg11[%200, %c0_49] : memref<64x32xf32, #tpu.memory_space<vmem>>, vector<8x32xf32>
    tpu.vector_store %arg11[%200, %c0_49], %199 {strides = array<i32>} : memref<64x32xf32, #tpu.memory_space<vmem>>, vector<8x32xf32>,
    %c8_i32_50 = arith.constant 8 : i32
    %c0_51 = arith.constant 0 : index
    %c0_52 = arith.constant 0 : index
    %202 = vector.load %arg11[%c0_51, %c0_52] : memref<64x32xf32, #tpu.memory_space<vmem>>, vector<64x32xf32>
    %c0_53 = arith.constant 0 : index
    %c0_54 = arith.constant 0 : index
    %203 = vector.load %arg4[%c0_53, %c0_54] : memref<32x128xf32, #tpu.memory_space<vmem>>, vector<32x128xf32>
    %c0_55 = arith.constant 0 : index
    %c0_56 = arith.constant 0 : index
    %204 = vector.load %arg5[%c0_55, %c0_56] : memref<32x128xf32, #tpu.memory_space<vmem>>, vector<32x128xf32>
    %c0_57 = arith.constant 0 : index
    %c0_58 = arith.constant 0 : index
    %205 = vector.load %arg6[%c0_57, %c0_58] : memref<1x128xf32, #tpu.memory_space<vmem>>, vector<1x128xf32>
    %cst_59 = arith.constant dense<0.000000e+00> : vector<64x128xf32>
    %206 = tpu.matmul %202, %203, %cst_59 {dimension_numbers = #tpu.dot_dimension_numbers<[1], [0], [0], [1], [0, 0, 1, 1], [], []>} : vector<64x32xf32>, vector<32x128xf32>, vector<64x128xf32> -> vector<64x128xf32>
    %207 = vector.broadcast %205 : vector<1x128xf32> to vector<64x128xf32>
    %208 = arith.addf %206, %207 : vector<64x128xf32>
    %c0_60 = arith.constant 0 : index
    %c0_61 = arith.constant 0 : index
    %209 = vector.load %arg10[%c0_60, %c0_61] : memref<64x128xf32, #tpu.memory_space<vmem>>, vector<64x128xf32>
    tpu.vector_store %arg10[%c0_60, %c0_61], %208 {strides = array<i32>} : memref<64x128xf32, #tpu.memory_space<vmem>>, vector<64x128xf32>,
    %cst_62 = arith.constant 0.000000e+00 : f32
    %210 = vector.broadcast %cst_62 : f32 to vector<8x32xf32>
    %cst_63 = arith.constant 0.000000e+00 : f32
    %211 = vector.broadcast %cst_63 : f32 to vector<8x32xf32>
    %c0_i32_64 = arith.constant 0 : i32
    %c8_i32_65 = arith.constant 8 : i32
    %212 = arith.muli %c0_i32_64, %c8_i32_65 : i32
    %213 = tpu.assume_multiple %212, 8 : i32
    %214 = arith.index_cast %213 : i32 to index
    %c0_66 = arith.constant 0 : index
    %215 = vector.load %arg10[%214, %c0_66] : memref<64x128xf32, #tpu.memory_space<vmem>>, vector<8x128xf32>
    %cst_67 = arith.constant dense<0.000000e+00> : vector<8x128xf32>
    %216 = tpu.matmul %210, %204, %cst_67 {dimension_numbers = #tpu.dot_dimension_numbers<[1], [0], [0], [1], [0, 0, 1, 1], [], []>} : vector<8x32xf32>, vector<32x128xf32>, vector<8x128xf32> -> vector<8x128xf32>
    %217 = arith.addf %215, %216 : vector<8x128xf32>
    %218 = vector.extract_strided_slice %217 {offsets = [0, 0], sizes = [8, 96], strides = [1, 1]} : vector<8x128xf32> to vector<8x96xf32>
    %219 = arith.negf %218 : vector<8x96xf32>
    %220 = math.exp %219 : vector<8x96xf32>
    %cst_68 = arith.constant 1.000000e+00 : f32
    %221 = vector.broadcast %cst_68 : f32 to vector<8x96xf32>
    %222 = arith.addf %221, %220 : vector<8x96xf32>
    %223 = arith.divf %221, %222 : vector<8x96xf32>
    %224 = vector.extract_strided_slice %217 {offsets = [0, 96], sizes = [8, 32], strides = [1, 1]} : vector<8x128xf32> to vector<8x32xf32>
    %225 = math.tanh %224 : vector<8x32xf32>
    %226 = vector.extract_strided_slice %223 {offsets = [0, 0], sizes = [8, 32], strides = [1, 1]} : vector<8x96xf32> to vector<8x32xf32>
    %227 = vector.extract_strided_slice %223 {offsets = [0, 32], sizes = [8, 32], strides = [1, 1]} : vector<8x96xf32> to vector<8x32xf32>
    %228 = vector.extract_strided_slice %223 {offsets = [0, 64], sizes = [8, 32], strides = [1, 1]} : vector<8x96xf32> to vector<8x32xf32>
    %229 = arith.mulf %227, %211 : vector<8x32xf32>
    %230 = arith.mulf %226, %225 : vector<8x32xf32>
    %231 = arith.addf %229, %230 : vector<8x32xf32>
    %232 = math.tanh %231 : vector<8x32xf32>
    %233 = arith.mulf %228, %232 : vector<8x32xf32>
    %c1_i32_69 = arith.constant 1 : i32
    %c8_i32_70 = arith.constant 8 : i32
    %234 = arith.muli %c1_i32_69, %c8_i32_70 : i32
    %235 = tpu.assume_multiple %234, 8 : i32
    %236 = arith.index_cast %235 : i32 to index
    %c0_71 = arith.constant 0 : index
    %237 = vector.load %arg10[%236, %c0_71] : memref<64x128xf32, #tpu.memory_space<vmem>>, vector<8x128xf32>
    %cst_72 = arith.constant dense<0.000000e+00> : vector<8x128xf32>
    %238 = tpu.matmul %233, %204, %cst_72 {dimension_numbers = #tpu.dot_dimension_numbers<[1], [0], [0], [1], [0, 0, 1, 1], [], []>} : vector<8x32xf32>, vector<32x128xf32>, vector<8x128xf32> -> vector<8x128xf32>
    %239 = arith.addf %237, %238 : vector<8x128xf32>
    %240 = vector.extract_strided_slice %239 {offsets = [0, 0], sizes = [8, 96], strides = [1, 1]} : vector<8x128xf32> to vector<8x96xf32>
    %241 = arith.negf %240 : vector<8x96xf32>
    %242 = math.exp %241 : vector<8x96xf32>
    %cst_73 = arith.constant 1.000000e+00 : f32
    %243 = vector.broadcast %cst_73 : f32 to vector<8x96xf32>
    %244 = arith.addf %243, %242 : vector<8x96xf32>
    %245 = arith.divf %243, %244 : vector<8x96xf32>
    %246 = vector.extract_strided_slice %239 {offsets = [0, 96], sizes = [8, 32], strides = [1, 1]} : vector<8x128xf32> to vector<8x32xf32>
    %247 = math.tanh %246 : vector<8x32xf32>
    %248 = vector.extract_strided_slice %245 {offsets = [0, 0], sizes = [8, 32], strides = [1, 1]} : vector<8x96xf32> to vector<8x32xf32>
    %249 = vector.extract_strided_slice %245 {offsets = [0, 32], sizes = [8, 32], strides = [1, 1]} : vector<8x96xf32> to vector<8x32xf32>
    %250 = vector.extract_strided_slice %245 {offsets = [0, 64], sizes = [8, 32], strides = [1, 1]} : vector<8x96xf32> to vector<8x32xf32>
    %251 = arith.mulf %249, %231 : vector<8x32xf32>
    %252 = arith.mulf %248, %247 : vector<8x32xf32>
    %253 = arith.addf %251, %252 : vector<8x32xf32>
    %254 = math.tanh %253 : vector<8x32xf32>
    %255 = arith.mulf %250, %254 : vector<8x32xf32>
    %c2_i32_74 = arith.constant 2 : i32
    %c8_i32_75 = arith.constant 8 : i32
    %256 = arith.muli %c2_i32_74, %c8_i32_75 : i32
    %257 = tpu.assume_multiple %256, 8 : i32
    %258 = arith.index_cast %257 : i32 to index
    %c0_76 = arith.constant 0 : index
    %259 = vector.load %arg10[%258, %c0_76] : memref<64x128xf32, #tpu.memory_space<vmem>>, vector<8x128xf32>
    %cst_77 = arith.constant dense<0.000000e+00> : vector<8x128xf32>
    %260 = tpu.matmul %255, %204, %cst_77 {dimension_numbers = #tpu.dot_dimension_numbers<[1], [0], [0], [1], [0, 0, 1, 1], [], []>} : vector<8x32xf32>, vector<32x128xf32>, vector<8x128xf32> -> vector<8x128xf32>
    %261 = arith.addf %259, %260 : vector<8x128xf32>
    %262 = vector.extract_strided_slice %261 {offsets = [0, 0], sizes = [8, 96], strides = [1, 1]} : vector<8x128xf32> to vector<8x96xf32>
    %263 = arith.negf %262 : vector<8x96xf32>
    %264 = math.exp %263 : vector<8x96xf32>
    %cst_78 = arith.constant 1.000000e+00 : f32
    %265 = vector.broadcast %cst_78 : f32 to vector<8x96xf32>
    %266 = arith.addf %265, %264 : vector<8x96xf32>
    %267 = arith.divf %265, %266 : vector<8x96xf32>
    %268 = vector.extract_strided_slice %261 {offsets = [0, 96], sizes = [8, 32], strides = [1, 1]} : vector<8x128xf32> to vector<8x32xf32>
    %269 = math.tanh %268 : vector<8x32xf32>
    %270 = vector.extract_strided_slice %267 {offsets = [0, 0], sizes = [8, 32], strides = [1, 1]} : vector<8x96xf32> to vector<8x32xf32>
    %271 = vector.extract_strided_slice %267 {offsets = [0, 32], sizes = [8, 32], strides = [1, 1]} : vector<8x96xf32> to vector<8x32xf32>
    %272 = vector.extract_strided_slice %267 {offsets = [0, 64], sizes = [8, 32], strides = [1, 1]} : vector<8x96xf32> to vector<8x32xf32>
    %273 = arith.mulf %271, %253 : vector<8x32xf32>
    %274 = arith.mulf %270, %269 : vector<8x32xf32>
    %275 = arith.addf %273, %274 : vector<8x32xf32>
    %276 = math.tanh %275 : vector<8x32xf32>
    %277 = arith.mulf %272, %276 : vector<8x32xf32>
    %c3_i32_79 = arith.constant 3 : i32
    %c8_i32_80 = arith.constant 8 : i32
    %278 = arith.muli %c3_i32_79, %c8_i32_80 : i32
    %279 = tpu.assume_multiple %278, 8 : i32
    %280 = arith.index_cast %279 : i32 to index
    %c0_81 = arith.constant 0 : index
    %281 = vector.load %arg10[%280, %c0_81] : memref<64x128xf32, #tpu.memory_space<vmem>>, vector<8x128xf32>
    %cst_82 = arith.constant dense<0.000000e+00> : vector<8x128xf32>
    %282 = tpu.matmul %277, %204, %cst_82 {dimension_numbers = #tpu.dot_dimension_numbers<[1], [0], [0], [1], [0, 0, 1, 1], [], []>} : vector<8x32xf32>, vector<32x128xf32>, vector<8x128xf32> -> vector<8x128xf32>
    %283 = arith.addf %281, %282 : vector<8x128xf32>
    %284 = vector.extract_strided_slice %283 {offsets = [0, 0], sizes = [8, 96], strides = [1, 1]} : vector<8x128xf32> to vector<8x96xf32>
    %285 = arith.negf %284 : vector<8x96xf32>
    %286 = math.exp %285 : vector<8x96xf32>
    %cst_83 = arith.constant 1.000000e+00 : f32
    %287 = vector.broadcast %cst_83 : f32 to vector<8x96xf32>
    %288 = arith.addf %287, %286 : vector<8x96xf32>
    %289 = arith.divf %287, %288 : vector<8x96xf32>
    %290 = vector.extract_strided_slice %283 {offsets = [0, 96], sizes = [8, 32], strides = [1, 1]} : vector<8x128xf32> to vector<8x32xf32>
    %291 = math.tanh %290 : vector<8x32xf32>
    %292 = vector.extract_strided_slice %289 {offsets = [0, 0], sizes = [8, 32], strides = [1, 1]} : vector<8x96xf32> to vector<8x32xf32>
    %293 = vector.extract_strided_slice %289 {offsets = [0, 32], sizes = [8, 32], strides = [1, 1]} : vector<8x96xf32> to vector<8x32xf32>
    %294 = vector.extract_strided_slice %289 {offsets = [0, 64], sizes = [8, 32], strides = [1, 1]} : vector<8x96xf32> to vector<8x32xf32>
    %295 = arith.mulf %293, %275 : vector<8x32xf32>
    %296 = arith.mulf %292, %291 : vector<8x32xf32>
    %297 = arith.addf %295, %296 : vector<8x32xf32>
    %298 = math.tanh %297 : vector<8x32xf32>
    %299 = arith.mulf %294, %298 : vector<8x32xf32>
    %c4_i32_84 = arith.constant 4 : i32
    %c8_i32_85 = arith.constant 8 : i32
    %300 = arith.muli %c4_i32_84, %c8_i32_85 : i32
    %301 = tpu.assume_multiple %300, 8 : i32
    %302 = arith.index_cast %301 : i32 to index
    %c0_86 = arith.constant 0 : index
    %303 = vector.load %arg10[%302, %c0_86] : memref<64x128xf32, #tpu.memory_space<vmem>>, vector<8x128xf32>
    %cst_87 = arith.constant dense<0.000000e+00> : vector<8x128xf32>
    %304 = tpu.matmul %299, %204, %cst_87 {dimension_numbers = #tpu.dot_dimension_numbers<[1], [0], [0], [1], [0, 0, 1, 1], [], []>} : vector<8x32xf32>, vector<32x128xf32>, vector<8x128xf32> -> vector<8x128xf32>
    %305 = arith.addf %303, %304 : vector<8x128xf32>
    %306 = vector.extract_strided_slice %305 {offsets = [0, 0], sizes = [8, 96], strides = [1, 1]} : vector<8x128xf32> to vector<8x96xf32>
    %307 = arith.negf %306 : vector<8x96xf32>
    %308 = math.exp %307 : vector<8x96xf32>
    %cst_88 = arith.constant 1.000000e+00 : f32
    %309 = vector.broadcast %cst_88 : f32 to vector<8x96xf32>
    %310 = arith.addf %309, %308 : vector<8x96xf32>
    %311 = arith.divf %309, %310 : vector<8x96xf32>
    %312 = vector.extract_strided_slice %305 {offsets = [0, 96], sizes = [8, 32], strides = [1, 1]} : vector<8x128xf32> to vector<8x32xf32>
    %313 = math.tanh %312 : vector<8x32xf32>
    %314 = vector.extract_strided_slice %311 {offsets = [0, 0], sizes = [8, 32], strides = [1, 1]} : vector<8x96xf32> to vector<8x32xf32>
    %315 = vector.extract_strided_slice %311 {offsets = [0, 32], sizes = [8, 32], strides = [1, 1]} : vector<8x96xf32> to vector<8x32xf32>
    %316 = vector.extract_strided_slice %311 {offsets = [0, 64], sizes = [8, 32], strides = [1, 1]} : vector<8x96xf32> to vector<8x32xf32>
    %317 = arith.mulf %315, %297 : vector<8x32xf32>
    %318 = arith.mulf %314, %313 : vector<8x32xf32>
    %319 = arith.addf %317, %318 : vector<8x32xf32>
    %320 = math.tanh %319 : vector<8x32xf32>
    %321 = arith.mulf %316, %320 : vector<8x32xf32>
    %c5_i32_89 = arith.constant 5 : i32
    %c8_i32_90 = arith.constant 8 : i32
    %322 = arith.muli %c5_i32_89, %c8_i32_90 : i32
    %323 = tpu.assume_multiple %322, 8 : i32
    %324 = arith.index_cast %323 : i32 to index
    %c0_91 = arith.constant 0 : index
    %325 = vector.load %arg10[%324, %c0_91] : memref<64x128xf32, #tpu.memory_space<vmem>>, vector<8x128xf32>
    %cst_92 = arith.constant dense<0.000000e+00> : vector<8x128xf32>
    %326 = tpu.matmul %321, %204, %cst_92 {dimension_numbers = #tpu.dot_dimension_numbers<[1], [0], [0], [1], [0, 0, 1, 1], [], []>} : vector<8x32xf32>, vector<32x128xf32>, vector<8x128xf32> -> vector<8x128xf32>
    %327 = arith.addf %325, %326 : vector<8x128xf32>
    %328 = vector.extract_strided_slice %327 {offsets = [0, 0], sizes = [8, 96], strides = [1, 1]} : vector<8x128xf32> to vector<8x96xf32>
    %329 = arith.negf %328 : vector<8x96xf32>
    %330 = math.exp %329 : vector<8x96xf32>
    %cst_93 = arith.constant 1.000000e+00 : f32
    %331 = vector.broadcast %cst_93 : f32 to vector<8x96xf32>
    %332 = arith.addf %331, %330 : vector<8x96xf32>
    %333 = arith.divf %331, %332 : vector<8x96xf32>
    %334 = vector.extract_strided_slice %327 {offsets = [0, 96], sizes = [8, 32], strides = [1, 1]} : vector<8x128xf32> to vector<8x32xf32>
    %335 = math.tanh %334 : vector<8x32xf32>
    %336 = vector.extract_strided_slice %333 {offsets = [0, 0], sizes = [8, 32], strides = [1, 1]} : vector<8x96xf32> to vector<8x32xf32>
    %337 = vector.extract_strided_slice %333 {offsets = [0, 32], sizes = [8, 32], strides = [1, 1]} : vector<8x96xf32> to vector<8x32xf32>
    %338 = vector.extract_strided_slice %333 {offsets = [0, 64], sizes = [8, 32], strides = [1, 1]} : vector<8x96xf32> to vector<8x32xf32>
    %339 = arith.mulf %337, %319 : vector<8x32xf32>
    %340 = arith.mulf %336, %335 : vector<8x32xf32>
    %341 = arith.addf %339, %340 : vector<8x32xf32>
    %342 = math.tanh %341 : vector<8x32xf32>
    %343 = arith.mulf %338, %342 : vector<8x32xf32>
    %c6_i32_94 = arith.constant 6 : i32
    %c8_i32_95 = arith.constant 8 : i32
    %344 = arith.muli %c6_i32_94, %c8_i32_95 : i32
    %345 = tpu.assume_multiple %344, 8 : i32
    %346 = arith.index_cast %345 : i32 to index
    %c0_96 = arith.constant 0 : index
    %347 = vector.load %arg10[%346, %c0_96] : memref<64x128xf32, #tpu.memory_space<vmem>>, vector<8x128xf32>
    %cst_97 = arith.constant dense<0.000000e+00> : vector<8x128xf32>
    %348 = tpu.matmul %343, %204, %cst_97 {dimension_numbers = #tpu.dot_dimension_numbers<[1], [0], [0], [1], [0, 0, 1, 1], [], []>} : vector<8x32xf32>, vector<32x128xf32>, vector<8x128xf32> -> vector<8x128xf32>
    %349 = arith.addf %347, %348 : vector<8x128xf32>
    %350 = vector.extract_strided_slice %349 {offsets = [0, 0], sizes = [8, 96], strides = [1, 1]} : vector<8x128xf32> to vector<8x96xf32>
    %351 = arith.negf %350 : vector<8x96xf32>
    %352 = math.exp %351 : vector<8x96xf32>
    %cst_98 = arith.constant 1.000000e+00 : f32
    %353 = vector.broadcast %cst_98 : f32 to vector<8x96xf32>
    %354 = arith.addf %353, %352 : vector<8x96xf32>
    %355 = arith.divf %353, %354 : vector<8x96xf32>
    %356 = vector.extract_strided_slice %349 {offsets = [0, 96], sizes = [8, 32], strides = [1, 1]} : vector<8x128xf32> to vector<8x32xf32>
    %357 = math.tanh %356 : vector<8x32xf32>
    %358 = vector.extract_strided_slice %355 {offsets = [0, 0], sizes = [8, 32], strides = [1, 1]} : vector<8x96xf32> to vector<8x32xf32>
    %359 = vector.extract_strided_slice %355 {offsets = [0, 32], sizes = [8, 32], strides = [1, 1]} : vector<8x96xf32> to vector<8x32xf32>
    %360 = vector.extract_strided_slice %355 {offsets = [0, 64], sizes = [8, 32], strides = [1, 1]} : vector<8x96xf32> to vector<8x32xf32>
    %361 = arith.mulf %359, %341 : vector<8x32xf32>
    %362 = arith.mulf %358, %357 : vector<8x32xf32>
    %363 = arith.addf %361, %362 : vector<8x32xf32>
    %364 = math.tanh %363 : vector<8x32xf32>
    %365 = arith.mulf %360, %364 : vector<8x32xf32>
    %c7_i32_99 = arith.constant 7 : i32
    %c8_i32_100 = arith.constant 8 : i32
    %366 = arith.muli %c7_i32_99, %c8_i32_100 : i32
    %367 = tpu.assume_multiple %366, 8 : i32
    %368 = arith.index_cast %367 : i32 to index
    %c0_101 = arith.constant 0 : index
    %369 = vector.load %arg10[%368, %c0_101] : memref<64x128xf32, #tpu.memory_space<vmem>>, vector<8x128xf32>
    %cst_102 = arith.constant dense<0.000000e+00> : vector<8x128xf32>
    %370 = tpu.matmul %365, %204, %cst_102 {dimension_numbers = #tpu.dot_dimension_numbers<[1], [0], [0], [1], [0, 0, 1, 1], [], []>} : vector<8x32xf32>, vector<32x128xf32>, vector<8x128xf32> -> vector<8x128xf32>
    %371 = arith.addf %369, %370 : vector<8x128xf32>
    %372 = vector.extract_strided_slice %371 {offsets = [0, 0], sizes = [8, 96], strides = [1, 1]} : vector<8x128xf32> to vector<8x96xf32>
    %373 = arith.negf %372 : vector<8x96xf32>
    %374 = math.exp %373 : vector<8x96xf32>
    %cst_103 = arith.constant 1.000000e+00 : f32
    %375 = vector.broadcast %cst_103 : f32 to vector<8x96xf32>
    %376 = arith.addf %375, %374 : vector<8x96xf32>
    %377 = arith.divf %375, %376 : vector<8x96xf32>
    %378 = vector.extract_strided_slice %371 {offsets = [0, 96], sizes = [8, 32], strides = [1, 1]} : vector<8x128xf32> to vector<8x32xf32>
    %379 = math.tanh %378 : vector<8x32xf32>
    %380 = vector.extract_strided_slice %377 {offsets = [0, 0], sizes = [8, 32], strides = [1, 1]} : vector<8x96xf32> to vector<8x32xf32>
    %381 = vector.extract_strided_slice %377 {offsets = [0, 32], sizes = [8, 32], strides = [1, 1]} : vector<8x96xf32> to vector<8x32xf32>
    %382 = vector.extract_strided_slice %377 {offsets = [0, 64], sizes = [8, 32], strides = [1, 1]} : vector<8x96xf32> to vector<8x32xf32>
    %383 = arith.mulf %381, %363 : vector<8x32xf32>
    %384 = arith.mulf %380, %379 : vector<8x32xf32>
    %385 = arith.addf %383, %384 : vector<8x32xf32>
    %386 = math.tanh %385 : vector<8x32xf32>
    %387 = arith.mulf %382, %386 : vector<8x32xf32>
    %c8_i32_104 = arith.constant 8 : i32
    %c0_105 = arith.constant 0 : index
    %c0_106 = arith.constant 0 : index
    %388 = vector.load %arg7[%c0_105, %c0_106] : memref<32x10xf32, #tpu.memory_space<vmem>>, vector<32x10xf32>
    %cst_107 = arith.constant dense<0.000000e+00> : vector<8x10xf32>
    %389 = tpu.matmul %387, %388, %cst_107 {dimension_numbers = #tpu.dot_dimension_numbers<[1], [0], [0], [1], [0, 0, 1, 1], [], []>} : vector<8x32xf32>, vector<32x10xf32>, vector<8x10xf32> -> vector<8x10xf32>
    %c0_108 = arith.constant 0 : index
    %c0_109 = arith.constant 0 : index
    %390 = vector.load %arg8[%c0_108, %c0_109] : memref<1x10xf32, #tpu.memory_space<vmem>>, vector<1x10xf32>
    %391 = vector.broadcast %390 : vector<1x10xf32> to vector<8x10xf32>
    %392 = arith.addf %389, %391 : vector<8x10xf32>
    %c0_110 = arith.constant 0 : index
    %c0_111 = arith.constant 0 : index
    %393 = vector.load %arg9[%c0_110, %c0_111] : memref<8x10xf32, #tpu.memory_space<vmem>>, vector<8x10xf32>
    tpu.vector_store %arg9[%c0_110, %c0_111], %392 {strides = array<i32>} : memref<8x10xf32, #tpu.memory_space<vmem>>, vector<8x10xf32>,
    return
  }
}

</mosaic_0001>

<bundles_post_ra>
// kernel: lstm_model_forward.1
= control target key start
LH: loop header
LB: loop body
LE: loop exit
PB: predicated region body
PF: predicated region fallthrough
CT: control target
= control target key end

     0   :  { %vm52_vm0 = vcmask 64512   ;;  %v2594_v0 = vmov 0.0   ;;  %vm2595_vm1 = vmmov 0   ;;  %s2596_s23 = smov 32   ;;  %vm191_vm2 = vcmask 261120   ;;  %s3073_s1 = inlined_call_operand.vmem [shape: f32[8,128], index: 1, kind: input, shape index: {}]   ;;  %s3074_s2 = inlined_call_operand.vmem [shape: f32[32,128], index: 2, kind: input, shape index: {}]   ;;  %s3075_s0 = inlined_call_operand.vmem [shape: f32[64,8], index: 0, kind: input, shape index: {}]   ;;  %s3076_s3 = inlined_call_operand.vmem [shape: f32[1,128], index: 3, kind: input, shape index: {}]   ;;  %s3077_s4 = inlined_call_operand.vmem [shape: f32[32,128], index: 4, kind: input, shape index: {}]   ;;  %s3078_s5 = inlined_call_operand.vmem [shape: f32[32,128], index: 5, kind: input, shape index: {}]   ;;  %s3079_s6 = inlined_call_operand.vmem [shape: f32[1,128], index: 6, kind: input, shape index: {}]   ;;  %s3080_s7 = inlined_call_operand.vmem [shape: f32[32,10], index: 7, kind: input, shape index: {}]   ;;  %s3081_s8 = inlined_call_operand.vmem [shape: f32[1,10], index: 8, kind: input, shape index: {}]   ;;  %s3082_s9 = inlined_call_operand.vmem [shape: f32[8,10], index: 9, kind: output, shape index: {}]  }
   0x1   :  { %2255 = vmatprep.subr.mxu1 %v2594_v0  ;;  %v40_v1 = vld [vmem:[%s3073_s1] sm:$0xff]  ;;  %v2655_v2 = vld [vmem:[%s3074_s2 + $0x18] sm:$0xff]  ;;  %2263 = vmatprep.mubr.msk.f32.mxu1 %vm2595_vm1, %v2594_v0  ;;  %v33_v4 = vld [vmem:[%s3075_s0 + $0x8] sm:$0xff]  ;;  %vm2079_vm3 = vcmask 80896  }
   0x2   :  { %v32_v3 = vld [vmem:[%s3075_s0] sm:$0xff]  ;;  %2241 = vmatprep.subr.mxu0 %v40_v1  ;;  %2256 = vmatpush3.msra.mxu1 %v2655_v2  ;;  %v2669_v5 = vld [vmem:[%s3074_s2 + $0x10] sm:$0xff]  ;;  %v2677_v6 = vld [vmem:[%s3074_s2 + $0x8] sm:$0xff] }
   0x3   :  { %2242 = vmatpush3.msra.mxu0 %v40_v1  ;;  %2243 = vmatprep.mubr.msk.f32.mxu0 %vm52_vm0, %v32_v3  ;;  %v2685_v7 = vld [vmem:[%s3074_s2] sm:$0xff]  ;;  %v34_v43 = vld [vmem:[%s3075_s0 + $0x10] sm:$0xff]  ;;  %v35_v44 = vld [vmem:[%s3075_s0 + $0x18] sm:$0xff] }
   0x4   :  { %2257 = vmatprep.subr.mxu1 %v2594_v0  ;;  %2244 = vmatmul.mubr.msk.f32.vlgmr.msra.gmra.mxu0 %vm52_vm0, %v33_v4  ;;  %v2713_v9 = vld [vmem:[%s3076_s3] ss:$0 sm:$0xff]  ;;  %s2597_s3 = smov 64   ;;  %v37_v46 = vld [vmem:[%s3075_s0 + $0x28] sm:$0xff]  ;;  %v38_v47 = vld [vmem:[%s3075_s0 + $0x30] sm:$0xff] }
   0x5   :  { %2258 = vmatpush3.msra.mxu1 %v2669_v5  ;;  %2277 = vmatprep.subr.mxu0 %v2594_v0  ;;  %v36_v45 = vld [vmem:[%s3075_s0 + $0x20] sm:$0xff]  ;;  %v39_v48 = vld [vmem:[%s3075_s0 + $0x38] sm:$0xff] }
   0x6   :  { %2259 = vmatprep.subr.mxu1 %v2594_v0  ;;  %2278 = vmatpush3.msra.mxu0 %v2655_v2 }
   0x7   :  { %2260 = vmatpush3.msra.mxu1 %v2677_v6  ;;  %2279 = vmatprep.subr.mxu0 %v2594_v0 }
   0x8   :  { %2261 = vmatprep.subr.mxu1 %v2594_v0  ;;  %2280 = vmatpush3.msra.mxu0 %v2669_v5 }
   0x9   :  { %2262 = vmatpush3.msra.mxu1 %v2685_v7  ;;  %2281 = vmatprep.subr.mxu0 %v2594_v0 }
   0xa   :  { %2264 = vmatmul.mubr.f32.vlgmr.msra.gmra.mxu1 %v2594_v0  ;;  %2266 = vmatprep.subr.mxu1 %v2594_v0 }
   0xb   :  { %2267 = vmatpush3.msra.mxu1 %v2655_v2  ;;  %2274 = vmatprep.mubr.msk.f32.mxu1 %vm2595_vm1, %v2594_v0 }
   0xc   :  { %2268 = vmatprep.subr.mxu1 %v2594_v0  ;;  %2282 = vmatpush3.msra.mxu0 %v2677_v6 }
   0xd   :  { %2269 = vmatpush3.msra.mxu1 %v2669_v5  ;;  %2283 = vmatprep.subr.mxu0 %v2594_v0 }
   0xe   :  { %2270 = vmatprep.subr.mxu1 %v2594_v0  ;;  %2284 = vmatpush3.msra.mxu0 %v2685_v7 }
   0xf   :  { %2271 = vmatpush3.msra.mxu1 %v2677_v6  ;;  %2299 = vmatprep.subr.mxu0 %v2594_v0 }
  0x10   :  { %2272 = vmatprep.subr.mxu1 %v2594_v0  ;;  %2246 = vmatprep.mubr.msk.f32.mxu0 %vm52_vm0, %v34_v43 }
  0x11   :  { %2273 = vmatpush3.msra.mxu1 %v2685_v7  ;;  %2247 = vmatmul.mubr.msk.f32.gmra.mxu0 %vm52_vm0, %v35_v44 }
  0x12   :  { %2288 = vmatprep.subr.mxu1 %v2594_v0  ;;  %2249 = vmatprep.mubr.msk.f32.mxu0 %vm52_vm0, %v36_v45 }
  0x15   :  { %2250 = vmatmul.mubr.msk.f32.gmra.mxu0 %vm52_vm0, %v37_v46 }
  0x16   :  { %2252 = vmatprep.mubr.msk.f32.mxu0 %vm52_vm0, %v38_v47 }
  0x19   :  { %2253 = vmatmul.mubr.msk.f32.gmra.mxu0 %vm52_vm0, %v39_v48 }
  0x1a   :  { %2285 = vmatprep.mubr.msk.f32.mxu0 %vm2595_vm1, %v2594_v0 }
  0xc4   :  { %v2245_v8 = vpop.f32.mrf.mxu0 }
  0xc5   :  { %v149_v29 = vadd.f32 %v2245_v8, %v2713_v9 }
  0xc6   :  { %v143_v10 = vpop.f32.mrf.mxu0 }
  0xc7   :  { %v144_v11 = vadd.f32 %v2713_v9, %v143_v10 }
  0xca   :  { %v261_v12 = vpop.f32.mrf.mxu1 }
  0xcb   :  { %v265_v13 = vadd.f32 %v261_v12, %v144_v11 }
  0xcc   :  { %v2265_v14 = vpop.f32.mrf.mxu1 }
  0xcd   :  { %2466 = vtanh.f32 %v265_v13  ;;  %v2094_v16 = vmul.f32 -1.442695, %v265_v13 }
  0xcf   :  { %2468 = vpow2.f32 %v2094_v16 }
  0xd1   :  { %v2248_v53 = vpop.f32.mrf.mxu0 }
  0xd3   :  { %v153_v54 = vpop.f32.mrf.mxu0 }
  0xd4   :  { %v154_v59 = vadd.f32 %v2713_v9, %v153_v54 }
  0xd5   :  { %v2775_v55 = vpop.f32.mrf.mxu0 }
  0xd7   :  { %v2777_v56 = vpop.f32.mrf.mxu0 }
  0xd9   :  { %v2779_v57 = vpop.f32.mrf.mxu0 }
  0xda   :  { %v2467_v15 = vpop.eup %2466 }
  0xdb   :  { %275 = vrot.lane.b32.xlu0 %v2467_v15, %s2596_s23  ;;  %v2781_v58 = vpop.f32.mrf.mxu0 }
  0xdc   :  { %v2469_v17 = vpop.eup %2468 }
  0xdd   :  { %v269_v18 = vadd.f32 1.0, %v2469_v17 }
  0xdf   :  { %2470 = vrcp.f32 %v269_v18 }
  0xec   :  { %v2471_v19 = vpop.eup %2470 }
  0xed   :  { %v273_v22 = vmul.f32 0.0, %v2471_v19 }
 0x14d   :  { %v276_v20 = vpop.permute.xlu0 %275 }
 0x14e   :  { %v278_v21 = vmul.f32 %v2471_v19, %v276_v20 }
 0x150   :  { %280 = vrot.lane.b32.xlu0 %v278_v21, %s2596_s23 }
 0x1c2   :  { %v281_v23 = vpop.permute.xlu0 %280 }
 0x1c3   :  { %v283_v24 = vadd.f32 %v281_v23, %v273_v22 }
 0x1c5   :  { %2472 = vtanh.f32 %v283_v24 }
 0x1d2   :  { %v2473_v25 = vpop.eup %2472 }
 0x1d3   :  { %286 = vrot.lane.b32.xlu1 %v2473_v25, %s2596_s23 }
 0x245   :  { %v287_v26 = vpop.permute.xlu1 %286 }
 0x246   :  { %v289_v27 = vmul.f32 %v2471_v19, %v287_v26  ;;  %v159_v19 = vadd.f32 %v2248_v53, %v2713_v9 }
 0x248   :  { %291 = vrot.lane.b32.xlu1 %v289_v27, %s2597_s3 }
 0x2ba   :  { %v292_v28 = vpop.permute.xlu1 %291 }
 0x2bb   :  { %294 = vst.msk [vmem:[#allocation3] sm:$0xff] %vm191_vm2, %v292_v28  ;;  %2275 = vmatmul.mubr.msk.f32.vlgmr.msra.gmra.mxu1 %vm191_vm2, %v292_v28 }
 0x2bc   :  { %2289 = vmatpush3.msra.mxu1 %v2655_v2  ;;  %2296 = vmatprep.mubr.msk.f32.mxu1 %vm2595_vm1, %v2594_v0 }
 0x2bd   :  { %2290 = vmatprep.subr.mxu1 %v2594_v0 }
 0x2be   :  { %2291 = vmatpush3.msra.mxu1 %v2669_v5 }
 0x2bf   :  { %2292 = vmatprep.subr.mxu1 %v2594_v0 }
 0x2c0   :  { %2293 = vmatpush3.msra.mxu1 %v2677_v6 }
 0x2c1   :  { %2294 = vmatprep.subr.mxu1 %v2594_v0 }
 0x2c2   :  { %2295 = vmatpush3.msra.mxu1 %v2685_v7 }
 0x2c3   :  { %2310 = vmatprep.subr.mxu1 %v2594_v0 }
 0x37b   :  { %v365_v30 = vpop.f32.mrf.mxu1 }
 0x37c   :  { %v369_v31 = vadd.f32 %v365_v30, %v149_v29 }
 0x37d   :  { %v2276_v32 = vpop.f32.mrf.mxu1 }
 0x37e   :  { %2474 = vtanh.f32 %v369_v31  ;;  %v2096_v34 = vmul.f32 -1.442695, %v369_v31 }
 0x380   :  { %2476 = vpow2.f32 %v2096_v34 }
 0x38b   :  { %v2475_v33 = vpop.eup %2474 }
 0x38c   :  { %379 = vrot.lane.b32.xlu0 %v2475_v33, %s2596_s23 }
 0x38d   :  { %v2477_v35 = vpop.eup %2476 }
 0x38e   :  { %v373_v36 = vadd.f32 1.0, %v2477_v35 }
 0x390   :  { %2478 = vrcp.f32 %v373_v36 }
 0x39d   :  { %v2479_v37 = vpop.eup %2478 }
 0x39e   :  { %v377_v40 = vmul.f32 %v2479_v37, %v283_v24 }
 0x3fe   :  { %v380_v38 = vpop.permute.xlu0 %379 }
 0x3ff   :  { %v382_v39 = vmul.f32 %v2479_v37, %v380_v38 }
 0x401   :  { %384 = vrot.lane.b32.xlu1 %v382_v39, %s2596_s23 }
 0x473   :  { %v385_v41 = vpop.permute.xlu1 %384 }
 0x474   :  { %v387_v42 = vadd.f32 %v385_v41, %v377_v40 }
 0x476   :  { %2480 = vtanh.f32 %v387_v42 }
 0x483   :  { %v2481_v49 = vpop.eup %2480 }
 0x484   :  { %390 = vrot.lane.b32.xlu0 %v2481_v49, %s2596_s23 }
 0x4f6   :  { %v391_v50 = vpop.permute.xlu0 %390 }
 0x4f7   :  { %v393_v51 = vmul.f32 %v2479_v37, %v391_v50  ;;  %v164_v37 = vadd.f32 %v2713_v9, %v2777_v56 }
 0x4f9   :  { %395 = vrot.lane.b32.xlu1 %v393_v51, %s2597_s3 }
 0x56b   :  { %v396_v52 = vpop.permute.xlu1 %395 }
 0x56c   :  { %399 = vst.msk [vmem:[#allocation3 + $0x8] sm:$0xff] %vm191_vm2, %v396_v52  ;;  %2286 = vmatmul.mubr.msk.f32.vlgmr.msra.gmra.mxu0 %vm191_vm2, %v396_v52 }
 0x56d   :  { %2300 = vmatpush3.msra.mxu0 %v2655_v2  ;;  %2307 = vmatprep.mubr.msk.f32.mxu0 %vm2595_vm1, %v2594_v0 }
 0x56e   :  { %2301 = vmatprep.subr.mxu0 %v2594_v0 }
 0x56f   :  { %2302 = vmatpush3.msra.mxu0 %v2669_v5 }
 0x570   :  { %2303 = vmatprep.subr.mxu0 %v2594_v0 }
 0x571   :  { %2304 = vmatpush3.msra.mxu0 %v2677_v6 }
 0x572   :  { %2305 = vmatprep.subr.mxu0 %v2594_v0 }
 0x573   :  { %2306 = vmatpush3.msra.mxu0 %v2685_v7 }
 0x574   :  { %2321 = vmatprep.subr.mxu0 %v2594_v0 }
 0x62c   :  { %v470_v60 = vpop.f32.mrf.mxu0 }
 0x62d   :  { %v474_v61 = vadd.f32 %v470_v60, %v154_v59 }
 0x62e   :  { %v2287_v62 = vpop.f32.mrf.mxu0 }
 0x62f   :  { %2482 = vtanh.f32 %v474_v61  ;;  %v2098_v1 = vmul.f32 -1.442695, %v474_v61 }
 0x631   :  { %2484 = vpow2.f32 %v2098_v1 }
 0x63c   :  { %v2483_v63 = vpop.eup %2482 }
 0x63d   :  { %484 = vrot.lane.b32.xlu0 %v2483_v63, %s2596_s23 }
 0x63e   :  { %v2485_v3 = vpop.eup %2484 }
 0x63f   :  { %v478_v4 = vadd.f32 1.0, %v2485_v3 }
 0x641   :  { %2486 = vrcp.f32 %v478_v4 }
 0x64e   :  { %v2487_v8 = vpop.eup %2486 }
 0x64f   :  { %v482_v12 = vmul.f32 %v2487_v8, %v387_v42 }
 0x6af   :  { %v485_v10 = vpop.permute.xlu0 %484 }
 0x6b0   :  { %v487_v11 = vmul.f32 %v2487_v8, %v485_v10 }
 0x6b2   :  { %489 = vrot.lane.b32.xlu1 %v487_v11, %s2596_s23 }
 0x724   :  { %v490_v13 = vpop.permute.xlu1 %489 }
 0x725   :  { %v492_v14 = vadd.f32 %v490_v13, %v482_v12 }
 0x727   :  { %2488 = vtanh.f32 %v492_v14 }
 0x734   :  { %v2489_v15 = vpop.eup %2488 }
 0x735   :  { %495 = vrot.lane.b32.xlu0 %v2489_v15, %s2596_s23  ;;  %v1030_v15 = vld [vmem:[#allocation3] sm:$0xff] }
 0x7a7   :  { %v496_v16 = vpop.permute.xlu0 %495 }
 0x7a8   :  { %v498_v17 = vmul.f32 %v2487_v8, %v496_v16  ;;  %v1041_v8 = vld [vmem:[%s3077_s4 + $0x18] sm:$0xff]  ;;  %v1039_v16 = vld [vmem:[%s3077_s4 + $0x8] sm:$0xff] }
 0x7aa   :  { %500 = vrot.lane.b32.xlu1 %v498_v17, %s2597_s3  ;;  %v1038_v17 = vld [vmem:[%s3077_s4] sm:$0xff] }
 0x81c   :  { %v501_v18 = vpop.permute.xlu1 %500 }
 0x81d   :  { %504 = vst.msk [vmem:[#allocation3 + $0x10] sm:$0xff] %vm191_vm2, %v501_v18  ;;  %2297 = vmatmul.mubr.msk.f32.vlgmr.msra.gmra.mxu1 %vm191_vm2, %v501_v18  ;;  %v1031_v18 = vld [vmem:[#allocation3 + $0x8] sm:$0xff] }
 0x81e   :  { %2311 = vmatpush3.msra.mxu1 %v2655_v2  ;;  %2318 = vmatprep.mubr.msk.f32.mxu1 %vm2595_vm1, %v2594_v0 }
 0x81f   :  { %2312 = vmatprep.subr.mxu1 %v2594_v0 }
 0x820   :  { %2313 = vmatpush3.msra.mxu1 %v2669_v5 }
 0x821   :  { %2314 = vmatprep.subr.mxu1 %v2594_v0 }
 0x822   :  { %2315 = vmatpush3.msra.mxu1 %v2677_v6 }
 0x823   :  { %2316 = vmatprep.subr.mxu1 %v2594_v0 }
 0x824   :  { %2317 = vmatpush3.msra.mxu1 %v2685_v7 }
 0x825   :  { %2332 = vmatprep.subr.mxu1 %v2594_v0 }
 0x8dd   :  { %v575_v20 = vpop.f32.mrf.mxu1 }
 0x8de   :  { %v579_v21 = vadd.f32 %v575_v20, %v159_v19  ;;  %v1032_v19 = vld [vmem:[#allocation3 + $0x10] sm:$0xff] }
 0x8df   :  { %v2298_v22 = vpop.f32.mrf.mxu1 }
 0x8e0   :  { %2490 = vtanh.f32 %v579_v21  ;;  %v2100_v24 = vmul.f32 -1.442695, %v579_v21 }
 0x8e2   :  { %2492 = vpow2.f32 %v2100_v24 }
 0x8ed   :  { %v2491_v23 = vpop.eup %2490 }
 0x8ee   :  { %589 = vrot.lane.b32.xlu0 %v2491_v23, %s2596_s23  ;;  %v174_v23 = vadd.f32 %v2713_v9, %v2781_v58 }
 0x8ef   :  { %v2493_v25 = vpop.eup %2492 }
 0x8f0   :  { %v583_v26 = vadd.f32 1.0, %v2493_v25 }
 0x8f2   :  { %2494 = vrcp.f32 %v583_v26 }
 0x8ff   :  { %v2495_v27 = vpop.eup %2494 }
 0x900   :  { %v587_v30 = vmul.f32 %v2495_v27, %v492_v14  ;;  %v1040_v14 = vld [vmem:[%s3077_s4 + $0x10] sm:$0xff] }
 0x960   :  { %v590_v28 = vpop.permute.xlu0 %589 }
 0x961   :  { %v592_v29 = vmul.f32 %v2495_v27, %v590_v28 }
 0x963   :  { %594 = vrot.lane.b32.xlu1 %v592_v29, %s2596_s23 }
 0x9d5   :  { %v595_v31 = vpop.permute.xlu1 %594 }
 0x9d6   :  { %v597_v32 = vadd.f32 %v595_v31, %v587_v30 }
 0x9d8   :  { %2496 = vtanh.f32 %v597_v32 }
 0x9e5   :  { %v2497_v33 = vpop.eup %2496 }
 0x9e6   :  { %600 = vrot.lane.b32.xlu0 %v2497_v33, %s2596_s23 }
 0xa58   :  { %v601_v34 = vpop.permute.xlu0 %600 }
 0xa59   :  { %v603_v35 = vmul.f32 %v2495_v27, %v601_v34 }
 0xa5b   :  { %605 = vrot.lane.b32.xlu1 %v603_v35, %s2597_s3 }
 0xacd   :  { %v606_v36 = vpop.permute.xlu1 %605 }
 0xace   :  { %609 = vst.msk [vmem:[#allocation3 + $0x18] sm:$0xff] %vm191_vm2, %v606_v36  ;;  %2308 = vmatmul.mubr.msk.f32.vlgmr.msra.gmra.mxu0 %vm191_vm2, %v606_v36 }
 0xacf   :  { %2322 = vmatpush3.msra.mxu0 %v2655_v2  ;;  %2329 = vmatprep.mubr.msk.f32.mxu0 %vm2595_vm1, %v2594_v0 }
 0xad0   :  { %2323 = vmatprep.subr.mxu0 %v2594_v0 }
 0xad1   :  { %2324 = vmatpush3.msra.mxu0 %v2669_v5 }
 0xad2   :  { %2325 = vmatprep.subr.mxu0 %v2594_v0 }
 0xad3   :  { %2326 = vmatpush3.msra.mxu0 %v2677_v6 }
 0xad4   :  { %2327 = vmatprep.subr.mxu0 %v2594_v0 }
 0xad5   :  { %2328 = vmatpush3.msra.mxu0 %v2685_v7  ;;  %v1033_v20 = vld [vmem:[#allocation3 + $0x18] sm:$0xff] }
 0xad6   :  { %2343 = vmatprep.subr.mxu0 %v1041_v8 }
 0xb8e   :  { %v680_v38 = vpop.f32.mrf.mxu0 }
 0xb8f   :  { %v684_v39 = vadd.f32 %v680_v38, %v164_v37  ;;  %v2872_v37 = vld [vmem:[%s3078_s5 + $0x18] sm:$0xff]  ;;  %v2878_v38 = vld [vmem:[%s3078_s5 + $0x10] sm:$0xff] }
 0xb90   :  { %v2309_v40 = vpop.f32.mrf.mxu0 }
 0xb91   :  { %2498 = vtanh.f32 %v684_v39  ;;  %v2102_v42 = vmul.f32 -1.442695, %v684_v39  ;;  %v2885_v39 = vld [vmem:[%s3078_s5 + $0x8] sm:$0xff]  ;;  %v2892_v40 = vld [vmem:[%s3078_s5] sm:$0xff] }
 0xb93   :  { %2500 = vpow2.f32 %v2102_v42 }
 0xb9e   :  { %v2499_v41 = vpop.eup %2498 }
 0xb9f   :  { %694 = vrot.lane.b32.xlu0 %v2499_v41, %s2596_s23 }
 0xba0   :  { %v2501_v43 = vpop.eup %2500 }
 0xba1   :  { %v688_v44 = vadd.f32 1.0, %v2501_v43 }
 0xba3   :  { %2502 = vrcp.f32 %v688_v44 }
 0xbb0   :  { %v2503_v45 = vpop.eup %2502 }
 0xbb1   :  { %v692_v48 = vmul.f32 %v2503_v45, %v597_v32 }
 0xc11   :  { %v695_v46 = vpop.permute.xlu0 %694 }
 0xc12   :  { %v697_v47 = vmul.f32 %v2503_v45, %v695_v46 }
 0xc14   :  { %699 = vrot.lane.b32.xlu1 %v697_v47, %s2596_s23 }
 0xc86   :  { %v700_v49 = vpop.permute.xlu1 %699 }
 0xc87   :  { %v702_v50 = vadd.f32 %v700_v49, %v692_v48 }
 0xc89   :  { %2504 = vtanh.f32 %v702_v50 }
 0xc96   :  { %v2505_v51 = vpop.eup %2504 }
 0xc97   :  { %705 = vrot.lane.b32.xlu0 %v2505_v51, %s2596_s23  ;;  %v2929_v51 = vld [vmem:[%s3079_s6] ss:$0 sm:$0xff] }
 0xd09   :  { %v706_v52 = vpop.permute.xlu0 %705 }
 0xd0a   :  { %v708_v53 = vmul.f32 %v2503_v45, %v706_v52  ;;  %v179_v45 = vadd.f32 %v2779_v57, %v2713_v9 }
 0xd0c   :  { %710 = vrot.lane.b32.xlu1 %v708_v53, %s2597_s3 }
 0xd7e   :  { %v711_v54 = vpop.permute.xlu1 %710 }
 0xd7f   :  { %714 = vst.msk [vmem:[#allocation3 + $0x20] sm:$0xff] %vm191_vm2, %v711_v54  ;;  %2319 = vmatmul.mubr.msk.f32.vlgmr.msra.gmra.mxu1 %vm191_vm2, %v711_v54 }
 0xd80   :  { %2333 = vmatpush3.msra.mxu1 %v2655_v2  ;;  %2340 = vmatprep.mubr.msk.f32.mxu1 %vm2595_vm1, %v2594_v0  ;;  %v169_v2 = vadd.f32 %v2775_v55, %v2713_v9 }
 0xd81   :  { %2334 = vmatprep.subr.mxu1 %v2594_v0 }
 0xd82   :  { %2335 = vmatpush3.msra.mxu1 %v2669_v5 }
 0xd83   :  { %2336 = vmatprep.subr.mxu1 %v2594_v0 }
 0xd84   :  { %2337 = vmatpush3.msra.mxu1 %v2677_v6 }
 0xd85   :  { %2338 = vmatprep.subr.mxu1 %v2594_v0 }
 0xd86   :  { %2339 = vmatpush3.msra.mxu1 %v2685_v7  ;;  %v1034_v21 = vld [vmem:[#allocation3 + $0x20] sm:$0xff] }
 0xd87   :  { %2363 = vmatprep.subr.mxu1 %v2594_v0 }
 0xe3f   :  { %v785_v56 = vpop.f32.mrf.mxu1 }
 0xe40   :  { %v789_v59 = vadd.f32 %v785_v56, %v169_v2 }
 0xe41   :  { %v2320_v60 = vpop.f32.mrf.mxu1 }
 0xe42   :  { %2506 = vtanh.f32 %v789_v59  ;;  %v2104_v5 = vmul.f32 -1.442695, %v789_v59 }
 0xe44   :  { %2508 = vpow2.f32 %v2104_v5 }
 0xe4f   :  { %v2507_v61 = vpop.eup %2506 }
 0xe50   :  { %799 = vrot.lane.b32.xlu0 %v2507_v61, %s2596_s23 }
 0xe51   :  { %v2509_v62 = vpop.eup %2508 }
 0xe52   :  { %v793_v6 = vadd.f32 1.0, %v2509_v62 }
 0xe54   :  { %2510 = vrcp.f32 %v793_v6 }
 0xe61   :  { %v2511_v63 = vpop.eup %2510 }
 0xe62   :  { %v797_v3 = vmul.f32 %v2511_v63, %v702_v50 }
 0xec2   :  { %v800_v1 = vpop.permute.xlu0 %799 }
 0xec3   :  { %v802_v7 = vmul.f32 %v2511_v63, %v800_v1 }
 0xec5   :  { %804 = vrot.lane.b32.xlu1 %v802_v7, %s2596_s23 }
 0xf37   :  { %v805_v4 = vpop.permute.xlu1 %804 }
 0xf38   :  { %v807_v55 = vadd.f32 %v805_v4, %v797_v3 }
 0xf3a   :  { %2512 = vtanh.f32 %v807_v55 }
 0xf47   :  { %v2513_v10 = vpop.eup %2512 }
 0xf48   :  { %810 = vrot.lane.b32.xlu0 %v2513_v10, %s2596_s23 }
 0xfba   :  { %v811_v11 = vpop.permute.xlu0 %810 }
 0xfbb   :  { %v813_v12 = vmul.f32 %v2511_v63, %v811_v11 }
 0xfbd   :  { %815 = vrot.lane.b32.xlu1 %v813_v12, %s2597_s3 }
0x102f   :  { %v816_v13 = vpop.permute.xlu1 %815 }
0x1030   :  { %819 = vst.msk [vmem:[#allocation3 + $0x28] sm:$0xff] %vm191_vm2, %v816_v13  ;;  %2330 = vmatmul.mubr.msk.f32.vlgmr.msra.gmra.mxu0 %vm191_vm2, %v816_v13 }
0x1031   :  { %2344 = vmatpush3.msra.mxu0 %v1041_v8  ;;  %2351 = vmatprep.mubr.msk.f32.mxu0 %vm191_vm2, %v1030_v15 }
0x1032   :  { %2345 = vmatprep.subr.mxu0 %v1040_v14 }
0x1033   :  { %2346 = vmatpush3.msra.mxu0 %v1040_v14 }
0x1034   :  { %2347 = vmatprep.subr.mxu0 %v1039_v16 }
0x1035   :  { %2348 = vmatpush3.msra.mxu0 %v1039_v16 }
0x1036   :  { %2349 = vmatprep.subr.mxu0 %v1038_v17 }
0x1037   :  { %2350 = vmatpush3.msra.mxu0 %v1038_v17  ;;  %v1035_v22 = vld [vmem:[#allocation3 + $0x28] sm:$0xff] }
0x1038   :  { %2352 = vmatmul.mubr.msk.f32.vlgmr.msra.gmra.mxu0 %vm191_vm2, %v1031_v18  ;;  %2385 = vmatprep.subr.mxu0 %v2594_v0 }
0x1039   :  { %2354 = vmatprep.mubr.msk.f32.mxu0 %vm191_vm2, %v1032_v19  ;;  %2386 = vmatpush3.msra.mxu0 %v2872_v37 }
0x103a   :  { %2387 = vmatprep.subr.mxu0 %v2594_v0 }
0x103b   :  { %2388 = vmatpush3.msra.mxu0 %v2878_v38 }
0x103c   :  { %2355 = vmatmul.mubr.msk.f32.gmra.mxu0 %vm191_vm2, %v1033_v20  ;;  %2389 = vmatprep.subr.mxu0 %v2594_v0 }
0x103d   :  { %2357 = vmatprep.mubr.msk.f32.mxu0 %vm191_vm2, %v1034_v21  ;;  %2390 = vmatpush3.msra.mxu0 %v2885_v39 }
0x103e   :  { %2391 = vmatprep.subr.mxu0 %v2594_v0 }
0x103f   :  { %2392 = vmatpush3.msra.mxu0 %v2892_v40 }
0x1040   :  { %2358 = vmatmul.mubr.msk.f32.gmra.mxu0 %vm191_vm2, %v1035_v22  ;;  %2407 = vmatprep.subr.mxu0 %v2594_v0 }
0x10f0   :  { %v890_v24 = vpop.f32.mrf.mxu0 }
0x10f1   :  { %v894_v25 = vadd.f32 %v890_v24, %v174_v23 }
0x10f2   :  { %v2331_v26 = vpop.f32.mrf.mxu0 }
0x10f3   :  { %2514 = vtanh.f32 %v894_v25  ;;  %v2106_v28 = vmul.f32 -1.442695, %v894_v25 }
0x10f5   :  { %2516 = vpow2.f32 %v2106_v28 }
0x10f8   :  { %v2924_v46 = vpop.f32.mrf.mxu0 }
0x10f9   :  { %v1149_v21 = vadd.f32 %v2924_v46, %v2929_v51 }
0x10fa   :  { %v1143_v50 = vpop.f32.mrf.mxu0 }
0x10fb   :  { %v1144_v52 = vadd.f32 %v2929_v51, %v1143_v50 }
0x1100   :  { %v2515_v27 = vpop.eup %2514 }
0x1101   :  { %904 = vrot.lane.b32.xlu0 %v2515_v27, %s2596_s23 }
0x1102   :  { %v2517_v29 = vpop.eup %2516 }
0x1103   :  { %v898_v30 = vadd.f32 1.0, %v2517_v29 }
0x1105   :  { %2518 = vrcp.f32 %v898_v30 }
0x1112   :  { %v2519_v31 = vpop.eup %2518 }
0x1113   :  { %v902_v34 = vmul.f32 %v2519_v31, %v807_v55 }
0x1173   :  { %v905_v32 = vpop.permute.xlu0 %904 }
0x1174   :  { %v907_v33 = vmul.f32 %v2519_v31, %v905_v32 }
0x1176   :  { %909 = vrot.lane.b32.xlu1 %v907_v33, %s2596_s23 }
0x11e8   :  { %v910_v35 = vpop.permute.xlu1 %909 }
0x11e9   :  { %v2865_v58 = vadd.f32 %v910_v35, %v902_v34 }
0x11eb   :  { %2520 = vtanh.f32 %v2865_v58 }
0x11f8   :  { %v2521_v36 = vpop.eup %2520 }
0x11f9   :  { %915 = vrot.lane.b32.xlu0 %v2521_v36, %s2596_s23 }
0x126b   :  { %v916_v41 = vpop.permute.xlu0 %915 }
0x126c   :  { %v918_v42 = vmul.f32 %v2519_v31, %v916_v41 }
0x126e   :  { %920 = vrot.lane.b32.xlu1 %v918_v42, %s2597_s3 }
0x12e0   :  { %v921_v43 = vpop.permute.xlu1 %920 }
0x12e1   :  { %924 = vst.msk [vmem:[#allocation3 + $0x30] sm:$0xff] %vm191_vm2, %v921_v43  ;;  %2341 = vmatmul.mubr.msk.f32.vlgmr.msra.gmra.mxu1 %vm191_vm2, %v921_v43 }
0x12e2   :  { %2364 = vmatpush3.msra.mxu1 %v2872_v37  ;;  %2371 = vmatprep.mubr.msk.f32.mxu1 %vm2595_vm1, %v2594_v0 }
0x12e3   :  { %2365 = vmatprep.subr.mxu1 %v2594_v0 }
0x12e4   :  { %2366 = vmatpush3.msra.mxu1 %v2878_v38 }
0x12e5   :  { %2367 = vmatprep.subr.mxu1 %v2594_v0 }
0x12e6   :  { %2368 = vmatpush3.msra.mxu1 %v2885_v39 }
0x12e7   :  { %2369 = vmatprep.subr.mxu1 %v2594_v0 }
0x12e8   :  { %2370 = vmatpush3.msra.mxu1 %v2892_v40  ;;  %v1036_v44 = vld [vmem:[#allocation3 + $0x30] sm:$0xff] }
0x12e9   :  { %2372 = vmatmul.mubr.f32.vlgmr.msra.gmra.mxu1 %v2594_v0  ;;  %2360 = vmatprep.mubr.msk.f32.mxu0 %vm191_vm2, %v1036_v44  ;;  %v2356_v44 = vpop.f32.mrf.mxu0 }
0x12ea   :  { %2374 = vmatprep.subr.mxu1 %v2594_v0  ;;  %2382 = vmatprep.mubr.msk.f32.mxu1 %vm2595_vm1, %v2594_v0 }
0x12eb   :  { %2375 = vmatpush3.msra.mxu1 %v2872_v37 }
0x12ec   :  { %2376 = vmatprep.subr.mxu1 %v2594_v0 }
0x12ed   :  { %2377 = vmatpush3.msra.mxu1 %v2878_v38 }
0x12ee   :  { %2378 = vmatprep.subr.mxu1 %v2594_v0 }
0x12ef   :  { %2379 = vmatpush3.msra.mxu1 %v2885_v39 }
0x12f0   :  { %2380 = vmatprep.subr.mxu1 %v2594_v0 }
0x12f1   :  { %2381 = vmatpush3.msra.mxu1 %v2892_v40 }
0x12f2   :  { %2396 = vmatprep.subr.mxu1 %v2594_v0 }
0x13a1   :  { %v995_v47 = vpop.f32.mrf.mxu1 }
0x13a2   :  { %v999_v48 = vadd.f32 %v995_v47, %v179_v45  ;;  %v1153_v45 = vpop.f32.mrf.mxu0 }
0x13a3   :  { %v2342_v49 = vpop.f32.mrf.mxu1  ;;  %v1154_v50 = vadd.f32 %v2929_v51, %v1153_v45 }
0x13a4   :  { %v2108_v3 = vmul.f32 -1.442695, %v999_v48  ;;  %v2973_v46 = vpop.f32.mrf.mxu0 }
0x13a6   :  { %v2975_v47 = vpop.f32.mrf.mxu0 }
0x13a9   :  { %v1257_v53 = vpop.f32.mrf.mxu1 }
0x13aa   :  { %v1261_v54 = vadd.f32 %v1257_v53, %v1144_v52 }
0x13ab   :  { %v2373_v2 = vpop.f32.mrf.mxu1 }
0x13ac   :  { %2522 = vtanh.f32 %v1261_v54  ;;  %v2118_v9 = vmul.f32 -1.442695, %v1261_v54 }
0x13ae   :  { %2524 = vpow2.f32 %v2118_v9 }
0x13b9   :  { %v2523_v56 = vpop.eup %2522 }
0x13ba   :  { %1271 = vrot.lane.b32.xlu0 %v2523_v56, %s2596_s23 }
0x13bb   :  { %v2525_v57 = vpop.eup %2524 }
0x13bc   :  { %v1265_v59 = vadd.f32 1.0, %v2525_v57 }
0x13be   :  { %2526 = vrcp.f32 %v1265_v59 }
0x13cb   :  { %v2527_v60 = vpop.eup %2526 }
0x13cc   :  { %v1269_v62 = vmul.f32 0.0, %v2527_v60 }
0x142c   :  { %v1272_v61 = vpop.permute.xlu0 %1271 }
0x142d   :  { %v1274_v5 = vmul.f32 %v2527_v60, %v1272_v61 }
0x142f   :  { %1276 = vrot.lane.b32.xlu1 %v1274_v5, %s2596_s23 }
0x14a1   :  { %v1277_v6 = vpop.permute.xlu1 %1276 }
0x14a2   :  { %v1279_v63 = vadd.f32 %v1277_v6, %v1269_v62 }
0x14a4   :  { %2528 = vtanh.f32 %v1279_v63 }
0x14a5   :  { %2530 = vtanh.f32 %v999_v48 }
0x14a6   :  { %2532 = vpow2.f32 %v2108_v3 }
0x14b1   :  { %v2529_v1 = vpop.eup %2528 }
0x14b2   :  { %1282 = vrot.lane.b32.xlu0 %v2529_v1, %s2596_s23  ;;  %v2531_v7 = vpop.eup %2530 }
0x14b3   :  { %v2533_v4 = vpop.eup %2532 }
0x14b4   :  { %v1003_v55 = vadd.f32 1.0, %v2533_v4  ;;  %v1159_v4 = vadd.f32 %v2356_v44, %v2929_v51 }
0x14b6   :  { %1009 = vrot.lane.b32.xlu0 %v2531_v7, %s2596_s23  ;;  %2534 = vrcp.f32 %v1003_v55 }
0x14c3   :  { %v2535_v11 = vpop.eup %2534 }
0x14c4   :  { %v1007_v15 = vmul.f32 %v2535_v11, %v2865_v58 }
0x1524   :  { %v1283_v8 = vpop.permute.xlu0 %1282 }
0x1525   :  { %v1285_v10 = vmul.f32 %v2527_v60, %v1283_v8 }
0x1527   :  { %1288 = vrot.lane.b32.xlu1 %v1285_v10, %s2597_s3 }
0x1528   :  { %v1010_v12 = vpop.permute.xlu0 %1009 }
0x1529   :  { %v1012_v13 = vmul.f32 %v2535_v11, %v1010_v12 }
0x152b   :  { %1014 = vrot.lane.b32.xlu0 %v1012_v13, %s2596_s23 }
0x1599   :  { %v1289_v14 = vpop.permute.xlu1 %1288 }
0x159a   :  { %2383 = vmatmul.mubr.msk.f32.vlgmr.msra.gmra.mxu1 %vm191_vm2, %v1289_v14 }
0x159b   :  { %2397 = vmatpush3.msra.mxu1 %v2872_v37  ;;  %2404 = vmatprep.mubr.msk.f32.mxu1 %vm2595_vm1, %v2594_v0 }
0x159c   :  { %2398 = vmatprep.subr.mxu1 %v2594_v0 }
0x159d   :  { %v1015_v16 = vpop.permute.xlu0 %1014  ;;  %2399 = vmatpush3.msra.mxu1 %v2878_v38 }
0x159e   :  { %v1017_v17 = vadd.f32 %v1015_v16, %v1007_v15  ;;  %2400 = vmatprep.subr.mxu1 %v2594_v0 }
0x159f   :  { %2401 = vmatpush3.msra.mxu1 %v2885_v39 }
0x15a0   :  { %2536 = vtanh.f32 %v1017_v17  ;;  %2402 = vmatprep.subr.mxu1 %v2594_v0 }
0x15a1   :  { %2403 = vmatpush3.msra.mxu1 %v2892_v40 }
0x15a2   :  { %2418 = vmatprep.subr.mxu1 %v2594_v0 }
0x15ad   :  { %v2537_v18 = vpop.eup %2536 }
0x15ae   :  { %1020 = vrot.lane.b32.xlu0 %v2537_v18, %s2596_s23 }
0x1620   :  { %v1021_v19 = vpop.permute.xlu0 %1020 }
0x1621   :  { %v1023_v20 = vmul.f32 %v2535_v11, %v1021_v19 }
0x1623   :  { %1025 = vrot.lane.b32.xlu0 %v1023_v20, %s2597_s3 }
0x165a   :  { %v1358_v22 = vpop.f32.mrf.mxu1 }
0x165b   :  { %v1362_v23 = vadd.f32 %v1358_v22, %v1149_v21 }
0x165c   :  { %v2384_v24 = vpop.f32.mrf.mxu1 }
0x165d   :  { %2538 = vtanh.f32 %v1362_v23  ;;  %v2120_v28 = vmul.f32 -1.442695, %v1362_v23 }
0x165f   :  { %2540 = vpow2.f32 %v2120_v28 }
0x166a   :  { %v2539_v25 = vpop.eup %2538 }
0x166b   :  { %1372 = vrot.lane.b32.xlu1 %v2539_v25, %s2596_s23  ;;  %v1164_v25 = vadd.f32 %v2929_v51, %v2975_v47  ;;  %v1169_v47 = vadd.f32 %v2973_v46, %v2929_v51 }
0x166c   :  { %v2541_v29 = vpop.eup %2540 }
0x166d   :  { %v1366_v30 = vadd.f32 1.0, %v2541_v29 }
0x166f   :  { %2542 = vrcp.f32 %v1366_v30 }
0x167c   :  { %v2543_v31 = vpop.eup %2542 }
0x167d   :  { %v1370_v34 = vmul.f32 %v2543_v31, %v1279_v63 }
0x1695   :  { %v1026_v26 = vpop.permute.xlu0 %1025 }
0x1696   :  { %1029 = vst.msk [vmem:[#allocation3 + $0x38] sm:$0xff] %vm191_vm2, %v1026_v26 }
0x169d   :  { %v1037_v27 = vld [vmem:[#allocation3 + $0x38] sm:$0xff] }
0x169e   :  { %2361 = vmatmul.mubr.msk.f32.gmra.mxu0 %vm191_vm2, %v1037_v27 }
0x169f   :  { %2393 = vmatprep.mubr.msk.f32.mxu0 %vm2595_vm1, %v2594_v0 }
0x16dd   :  { %v1373_v32 = vpop.permute.xlu1 %1372 }
0x16de   :  { %v1375_v33 = vmul.f32 %v2543_v31, %v1373_v32 }
0x16e0   :  { %1377 = vrot.lane.b32.xlu1 %v1375_v33, %s2596_s23 }
0x1752   :  { %v1378_v35 = vpop.permute.xlu1 %1377 }
0x1753   :  { %v1380_v58 = vadd.f32 %v1378_v35, %v1370_v34 }
0x1755   :  { %2544 = vtanh.f32 %v1380_v58 }
0x175e   :  { %v2977_v48 = vpop.f32.mrf.mxu0 }
0x1760   :  { %v2979_v49 = vpop.f32.mrf.mxu0 }
0x1762   :  { %v2545_v36 = vpop.eup %2544 }
0x1763   :  { %1383 = vrot.lane.b32.xlu1 %v2545_v36, %s2596_s23 }
0x17d5   :  { %v1384_v41 = vpop.permute.xlu1 %1383 }
0x17d6   :  { %v1386_v42 = vmul.f32 %v2543_v31, %v1384_v41 }
0x17d8   :  { %1389 = vrot.lane.b32.xlu1 %v1386_v42, %s2597_s3 }
0x184a   :  { %v1390_v43 = vpop.permute.xlu1 %1389 }
0x184b   :  { %2394 = vmatmul.mubr.msk.f32.vlgmr.msra.gmra.mxu0 %vm191_vm2, %v1390_v43 }
0x184c   :  { %2408 = vmatpush3.msra.mxu0 %v2872_v37  ;;  %2415 = vmatprep.mubr.msk.f32.mxu0 %vm2595_vm1, %v2594_v0 }
0x184d   :  { %2409 = vmatprep.subr.mxu0 %v2594_v0 }
0x184e   :  { %2410 = vmatpush3.msra.mxu0 %v2878_v38 }
0x184f   :  { %2411 = vmatprep.subr.mxu0 %v2594_v0 }
0x1850   :  { %2412 = vmatpush3.msra.mxu0 %v2885_v39 }
0x1851   :  { %2413 = vmatprep.subr.mxu0 %v2594_v0 }
0x1852   :  { %2414 = vmatpush3.msra.mxu0 %v2892_v40 }
0x1853   :  { %2429 = vmatprep.subr.mxu0 %v2594_v0 }
0x190b   :  { %v1459_v52 = vpop.f32.mrf.mxu0 }
0x190c   :  { %v1463_v53 = vadd.f32 %v1459_v52, %v1154_v50 }
0x190d   :  { %v2395_v54 = vpop.f32.mrf.mxu0 }
0x190e   :  { %2546 = vtanh.f32 %v1463_v53  ;;  %v2122_v56 = vmul.f32 -1.442695, %v1463_v53 }
0x1910   :  { %2548 = vpow2.f32 %v2122_v56 }
0x191b   :  { %v2547_v2 = vpop.eup %2546 }
0x191c   :  { %1473 = vrot.lane.b32.xlu0 %v2547_v2, %s2596_s23 }
0x191d   :  { %v2549_v9 = vpop.eup %2548 }
0x191e   :  { %v1467_v57 = vadd.f32 1.0, %v2549_v9 }
0x1920   :  { %2550 = vrcp.f32 %v1467_v57 }
0x192d   :  { %v2551_v59 = vpop.eup %2550 }
0x192e   :  { %v1471_v5 = vmul.f32 %v2551_v59, %v1380_v58 }
0x198e   :  { %v1474_v60 = vpop.permute.xlu0 %1473 }
0x198f   :  { %v1476_v61 = vmul.f32 %v2551_v59, %v1474_v60 }
0x1991   :  { %1478 = vrot.lane.b32.xlu1 %v1476_v61, %s2596_s23 }
0x1a03   :  { %v1479_v62 = vpop.permute.xlu1 %1478 }
0x1a04   :  { %v1481_v6 = vadd.f32 %v1479_v62, %v1471_v5  ;;  %v1174_v62 = vadd.f32 %v2929_v51, %v2979_v49 }
0x1a06   :  { %2552 = vtanh.f32 %v1481_v6 }
0x1a13   :  { %v2553_v63 = vpop.eup %2552 }
0x1a14   :  { %1484 = vrot.lane.b32.xlu0 %v2553_v63, %s2596_s23 }
0x1a86   :  { %v1485_v1 = vpop.permute.xlu0 %1484 }
0x1a87   :  { %v1487_v7 = vmul.f32 %v2551_v59, %v1485_v1 }
0x1a89   :  { %1490 = vrot.lane.b32.xlu1 %v1487_v7, %s2597_s3 }
0x1afb   :  { %v1491_v3 = vpop.permute.xlu1 %1490 }
0x1afc   :  { %2405 = vmatmul.mubr.msk.f32.vlgmr.msra.gmra.mxu1 %vm191_vm2, %v1491_v3 }
0x1afd   :  { %2419 = vmatpush3.msra.mxu1 %v2872_v37  ;;  %2426 = vmatprep.mubr.msk.f32.mxu1 %vm2595_vm1, %v2594_v0 }
0x1afe   :  { %2420 = vmatprep.subr.mxu1 %v2594_v0 }
0x1aff   :  { %2421 = vmatpush3.msra.mxu1 %v2878_v38 }
0x1b00   :  { %2422 = vmatprep.subr.mxu1 %v2594_v0 }
0x1b01   :  { %2423 = vmatpush3.msra.mxu1 %v2885_v39 }
0x1b02   :  { %2424 = vmatprep.subr.mxu1 %v2594_v0 }
0x1b03   :  { %2425 = vmatpush3.msra.mxu1 %v2892_v40 }
0x1b04   :  { %2440 = vmatprep.subr.mxu1 %v2594_v0 }
0x1bbc   :  { %v1560_v55 = vpop.f32.mrf.mxu1 }
0x1bbd   :  { %v1564_v8 = vadd.f32 %v1560_v55, %v1159_v4 }
0x1bbe   :  { %v2406_v10 = vpop.f32.mrf.mxu1 }
0x1bbf   :  { %2554 = vtanh.f32 %v1564_v8  ;;  %v2124_v12 = vmul.f32 -1.442695, %v1564_v8 }
0x1bc1   :  { %2556 = vpow2.f32 %v2124_v12 }
0x1bcc   :  { %v2555_v11 = vpop.eup %2554 }
0x1bcd   :  { %1574 = vrot.lane.b32.xlu0 %v2555_v11, %s2596_s23 }
0x1bce   :  { %v2557_v13 = vpop.eup %2556 }
0x1bcf   :  { %v1568_v14 = vadd.f32 1.0, %v2557_v13 }
0x1bd1   :  { %2558 = vrcp.f32 %v1568_v14 }
0x1bde   :  { %v2559_v15 = vpop.eup %2558 }
0x1bdf   :  { %v1572_v18 = vmul.f32 %v2559_v15, %v1481_v6 }
0x1c3f   :  { %v1575_v16 = vpop.permute.xlu0 %1574 }
0x1c40   :  { %v1577_v17 = vmul.f32 %v2559_v15, %v1575_v16 }
0x1c42   :  { %1579 = vrot.lane.b32.xlu1 %v1577_v17, %s2596_s23 }
0x1cb4   :  { %v1580_v19 = vpop.permute.xlu1 %1579 }
0x1cb5   :  { %v1582_v20 = vadd.f32 %v1580_v19, %v1572_v18  ;;  %v1179_v18 = vadd.f32 %v2977_v48, %v2929_v51  ;;  %v1996_v48 = vld [vmem:[%s3080_s7 + $0x18] sm:$0xff] }
0x1cb7   :  { %2560 = vtanh.f32 %v1582_v20 }
0x1cc4   :  { %v2561_v21 = vpop.eup %2560 }
0x1cc5   :  { %1585 = vrot.lane.b32.xlu0 %v2561_v21, %s2596_s23 }
0x1d37   :  { %v1586_v22 = vpop.permute.xlu0 %1585 }
0x1d38   :  { %v1588_v23 = vmul.f32 %v2559_v15, %v1586_v22 }
0x1d3a   :  { %1591 = vrot.lane.b32.xlu1 %v1588_v23, %s2597_s3 }
0x1dac   :  { %v1592_v24 = vpop.permute.xlu1 %1591 }
0x1dad   :  { %2416 = vmatmul.mubr.msk.f32.vlgmr.msra.gmra.mxu0 %vm191_vm2, %v1592_v24 }
0x1dae   :  { %2430 = vmatpush3.msra.mxu0 %v2872_v37  ;;  %2437 = vmatprep.mubr.msk.f32.mxu0 %vm2595_vm1, %v2594_v0 }
0x1daf   :  { %2431 = vmatprep.subr.mxu0 %v2594_v0 }
0x1db0   :  { %2432 = vmatpush3.msra.mxu0 %v2878_v38 }
0x1db1   :  { %2433 = vmatprep.subr.mxu0 %v2594_v0 }
0x1db2   :  { %2434 = vmatpush3.msra.mxu0 %v2885_v39 }
0x1db3   :  { %2435 = vmatprep.subr.mxu0 %v2594_v0 }
0x1db4   :  { %2436 = vmatpush3.msra.mxu0 %v2892_v40 }
0x1db5   :  { %2451 = vmatprep.subr.mxu0 %v2594_v0 }
0x1e6d   :  { %v1661_v26 = vpop.f32.mrf.mxu0 }
0x1e6e   :  { %v1665_v27 = vadd.f32 %v1661_v26, %v1164_v25 }
0x1e6f   :  { %v2417_v28 = vpop.f32.mrf.mxu0 }
0x1e70   :  { %2562 = vtanh.f32 %v1665_v27  ;;  %v2126_v30 = vmul.f32 -1.442695, %v1665_v27 }
0x1e72   :  { %2564 = vpow2.f32 %v2126_v30 }
0x1e7d   :  { %v2563_v29 = vpop.eup %2562 }
0x1e7e   :  { %1675 = vrot.lane.b32.xlu0 %v2563_v29, %s2596_s23 }
0x1e7f   :  { %v2565_v31 = vpop.eup %2564 }
0x1e80   :  { %v1669_v32 = vadd.f32 1.0, %v2565_v31  ;;  %v1995_v31 = vld [vmem:[%s3080_s7 + $0x10] sm:$0xff] }
0x1e82   :  { %2566 = vrcp.f32 %v1669_v32  ;;  %v1994_v32 = vld [vmem:[%s3080_s7 + $0x8] sm:$0xff] }
0x1e8f   :  { %v2567_v33 = vpop.eup %2566 }
0x1e90   :  { %v1673_v58 = vmul.f32 %v2567_v33, %v1582_v20 }
0x1ef0   :  { %v1676_v34 = vpop.permute.xlu0 %1675 }
0x1ef1   :  { %v1678_v35 = vmul.f32 %v2567_v33, %v1676_v34 }
0x1ef3   :  { %1680 = vrot.lane.b32.xlu1 %v1678_v35, %s2596_s23 }
0x1f65   :  { %v1681_v36 = vpop.permute.xlu1 %1680 }
0x1f66   :  { %v1683_v41 = vadd.f32 %v1681_v36, %v1673_v58 }
0x1f68   :  { %2568 = vtanh.f32 %v1683_v41 }
0x1f75   :  { %v2569_v42 = vpop.eup %2568 }
0x1f76   :  { %1686 = vrot.lane.b32.xlu0 %v2569_v42, %s2596_s23 }
0x1fe8   :  { %v1687_v43 = vpop.permute.xlu0 %1686 }
0x1fe9   :  { %v1689_v44 = vmul.f32 %v2567_v33, %v1687_v43  ;;  %v1993_v33 = vld [vmem:[%s3080_s7] sm:$0xff] }
0x1feb   :  { %1692 = vrot.lane.b32.xlu1 %v1689_v44, %s2597_s3 }
0x205d   :  { %v1693_v45 = vpop.permute.xlu1 %1692 }
0x205e   :  { %2427 = vmatmul.mubr.msk.f32.vlgmr.msra.gmra.mxu1 %vm191_vm2, %v1693_v45 }
0x205f   :  { %2441 = vmatpush3.msra.mxu1 %v2872_v37  ;;  %2448 = vmatprep.mubr.msk.f32.mxu1 %vm2595_vm1, %v2594_v0 }
0x2060   :  { %2442 = vmatprep.subr.mxu1 %v2594_v0 }
0x2061   :  { %2443 = vmatpush3.msra.mxu1 %v2878_v38 }
0x2062   :  { %2444 = vmatprep.subr.mxu1 %v2594_v0 }
0x2063   :  { %2445 = vmatpush3.msra.mxu1 %v2885_v39 }
0x2064   :  { %2446 = vmatprep.subr.mxu1 %v2594_v0 }
0x2065   :  { %2447 = vmatpush3.msra.mxu1 %v2892_v40 }
0x211e   :  { %v1762_v50 = vpop.f32.mrf.mxu1 }
0x211f   :  { %v1766_v37 = vadd.f32 %v1762_v50, %v1169_v47 }
0x2120   :  { %v2428_v52 = vpop.f32.mrf.mxu1 }
0x2121   :  { %2570 = vtanh.f32 %v1766_v37  ;;  %v2128_v54 = vmul.f32 -1.442695, %v1766_v37 }
0x2123   :  { %2572 = vpow2.f32 %v2128_v54 }
0x212e   :  { %v2571_v53 = vpop.eup %2570 }
0x212f   :  { %1776 = vrot.lane.b32.xlu0 %v2571_v53, %s2596_s23 }
0x2130   :  { %v2573_v38 = vpop.eup %2572 }
0x2131   :  { %v1770_v2 = vadd.f32 1.0, %v2573_v38 }
0x2133   :  { %2574 = vrcp.f32 %v1770_v2 }
0x2140   :  { %v2575_v39 = vpop.eup %2574 }
0x2141   :  { %v1774_v40 = vmul.f32 %v2575_v39, %v1683_v41  ;;  %v2133_v41 = vld [vmem:[%s3081_s8] ss:$0 sm:$0xff] }
0x21a1   :  { %v1777_v56 = vpop.permute.xlu0 %1776 }
0x21a2   :  { %v1779_v9 = vmul.f32 %v2575_v39, %v1777_v56 }
0x21a4   :  { %1781 = vrot.lane.b32.xlu1 %v1779_v9, %s2596_s23 }
0x2216   :  { %v1782_v57 = vpop.permute.xlu1 %1781 }
0x2217   :  { %v1784_v46 = vadd.f32 %v1782_v57, %v1774_v40 }
0x2219   :  { %2576 = vtanh.f32 %v1784_v46 }
0x2226   :  { %v2577_v59 = vpop.eup %2576 }
0x2227   :  { %1787 = vrot.lane.b32.xlu0 %v2577_v59, %s2596_s23 }
0x2299   :  { %v1788_v60 = vpop.permute.xlu0 %1787 }
0x229a   :  { %v1790_v61 = vmul.f32 %v2575_v39, %v1788_v60 }
0x229c   :  { %1793 = vrot.lane.b32.xlu1 %v1790_v61, %s2597_s3 }
0x230e   :  { %v1794_v5 = vpop.permute.xlu1 %1793 }
0x230f   :  { %2438 = vmatmul.mubr.msk.f32.vlgmr.msra.gmra.mxu0 %vm191_vm2, %v1794_v5 }
0x2310   :  { %2459 = vmatprep.mubr.msk.f32.mxu0 %vm2595_vm1, %v2594_v0  ;;  %2452 = vmatpush3.msra.mxu0 %v1996_v48 }
0x2311   :  { %2453 = vmatprep.subr.mxu0 %v2594_v0 }
0x2312   :  { %2454 = vmatpush3.msra.mxu0 %v1995_v31 }
0x2313   :  { %2455 = vmatprep.subr.mxu0 %v2594_v0 }
0x2314   :  { %2456 = vmatpush3.msra.mxu0 %v1994_v32 }
0x2315   :  { %2457 = vmatprep.subr.mxu0 %v2594_v0 }
0x2316   :  { %2458 = vmatpush3.msra.mxu0 %v1993_v33 }
0x23cf   :  { %v1863_v6 = vpop.f32.mrf.mxu0 }
0x23d0   :  { %v1867_v63 = vadd.f32 %v1863_v6, %v1174_v62 }
0x23d1   :  { %v2439_v1 = vpop.f32.mrf.mxu0 }
0x23d2   :  { %2578 = vtanh.f32 %v1867_v63  ;;  %v2130_v3 = vmul.f32 -1.442695, %v1867_v63 }
0x23d4   :  { %2580 = vpow2.f32 %v2130_v3 }
0x23df   :  { %v2579_v7 = vpop.eup %2578 }
0x23e0   :  { %1877 = vrot.lane.b32.xlu0 %v2579_v7, %s2596_s23 }
0x23e1   :  { %v2581_v4 = vpop.eup %2580 }
0x23e2   :  { %v1871_v55 = vadd.f32 1.0, %v2581_v4 }
0x23e4   :  { %2582 = vrcp.f32 %v1871_v55 }
0x23f1   :  { %v2583_v8 = vpop.eup %2582 }
0x23f2   :  { %v1875_v12 = vmul.f32 %v2583_v8, %v1784_v46 }
0x2452   :  { %v1878_v10 = vpop.permute.xlu0 %1877 }
0x2453   :  { %v1880_v11 = vmul.f32 %v2583_v8, %v1878_v10 }
0x2455   :  { %1882 = vrot.lane.b32.xlu1 %v1880_v11, %s2596_s23 }
0x24c7   :  { %v1883_v13 = vpop.permute.xlu1 %1882 }
0x24c8   :  { %v1885_v49 = vadd.f32 %v1883_v13, %v1875_v12 }
0x24ca   :  { %2584 = vtanh.f32 %v1885_v49 }
0x24d7   :  { %v2585_v14 = vpop.eup %2584 }
0x24d8   :  { %1888 = vrot.lane.b32.xlu0 %v2585_v14, %s2596_s23 }
0x254a   :  { %v1889_v15 = vpop.permute.xlu0 %1888 }
0x254b   :  { %v1891_v16 = vmul.f32 %v2583_v8, %v1889_v15 }
0x254d   :  { %1894 = vrot.lane.b32.xlu1 %v1891_v16, %s2597_s3 }
0x25bf   :  { %v1895_v17 = vpop.permute.xlu1 %1894 }
0x25c0   :  { %2449 = vmatmul.mubr.msk.f32.vlgmr.msra.gmra.mxu1 %vm191_vm2, %v1895_v17 }
0x2680   :  { %v1964_v19 = vpop.f32.mrf.mxu1 }
0x2681   :  { %v1968_v20 = vadd.f32 %v1964_v19, %v1179_v18 }
0x2682   :  { %v2450_v21 = vpop.f32.mrf.mxu1 }
0x2683   :  { %2586 = vtanh.f32 %v1968_v20  ;;  %v2132_v23 = vmul.f32 -1.442695, %v1968_v20 }
0x2685   :  { %2588 = vpow2.f32 %v2132_v23 }
0x2690   :  { %v2587_v22 = vpop.eup %2586 }
0x2691   :  { %1978 = vrot.lane.b32.xlu0 %v2587_v22, %s2596_s23 }
0x2692   :  { %v2589_v24 = vpop.eup %2588 }
0x2693   :  { %v1972_v25 = vadd.f32 1.0, %v2589_v24 }
0x2695   :  { %2590 = vrcp.f32 %v1972_v25 }
0x26a2   :  { %v2591_v26 = vpop.eup %2590 }
0x26a3   :  { %v1976_v29 = vmul.f32 %v2591_v26, %v1885_v49 }
0x2703   :  { %v1979_v27 = vpop.permute.xlu0 %1978 }
0x2704   :  { %v1981_v28 = vmul.f32 %v2591_v26, %v1979_v27 }
0x2706   :  { %1983 = vrot.lane.b32.xlu1 %v1981_v28, %s2596_s23 }
0x2778   :  { %v1984_v30 = vpop.permute.xlu1 %1983 }
0x2779   :  { %v1986_v51 = vadd.f32 %v1984_v30, %v1976_v29 }
0x277b   :  { %2592 = vtanh.f32 %v1986_v51 }
0x2788   :  { %v2593_v34 = vpop.eup %2592 }
0x2789   :  { %1989 = vrot.lane.b32.xlu0 %v2593_v34, %s2596_s23 }
0x27fb   :  { %v1990_v35 = vpop.permute.xlu0 %1989 }
0x27fc   :  { %v1992_v58 = vmul.f32 %v2591_v26, %v1990_v35 }
0x27fe   :  { %2005 = vrot.lane.b32.xlu1 %v1992_v58, %s2597_s3 }
0x2870   :  { %v2006_v36 = vpop.permute.xlu1 %2005 }
0x2871   :  { %2460 = vmatmul.mubr.msk.f32.vlgmr.msra.gmra.mxu0 %vm191_vm2, %v2006_v36 }
0x2931   :  { %v2075_v42 = vpop.f32.mrf.mxu0 }
0x2932   :  { %v2076_v43 = vadd.f32 %v2133_v41, %v2075_v42 }
0x2933   :  { %v2461_v44 = vpop.f32.mrf.mxu0 }
0x2934   :  { %2080 = vst.msk [vmem:[%s3082_s9] sm:$0xff] %vm2079_vm3, %v2076_v43 }

</bundles_post_ra>
